<compile_context>
chip_gen: v7x
topology: tpu7x:2x2x1
jax: 0.10.0
libtpu: 0.0.40
codegen_flags: <defaults>
</compile_context>

<pallas_src>
import functools

import numpy as np
import jax
import jax.numpy as jnp
from jax.experimental import pallas as pl
from jax.experimental.pallas import tpu as pltpu

# ---------------- synthetic BERT-MLM config (small) ----------------
VOCAB = 256
HIDDEN = 32
N_LAYERS = 2
N_HEADS = 2
HEAD_DIM = HIDDEN // N_HEADS
INTER = 64
MAX_POS = 16
TYPE_VOCAB = 2
LN_EPS = 1e-12

QKV_SLAB = 128                       # each head's Q/K/V slab is 128-lane aligned

# per-layer "misc" slab row layout (lane width = INTER)
M_WI = 0                             # rows [0, HIDDEN)           : wi  (HIDDEN, INTER)
M_WF = HIDDEN                        # rows [HIDDEN, HIDDEN+INTER): wf  (INTER, HIDDEN)
M_BI = HIDDEN + INTER                # bi (INTER,)
M_BO = M_BI + 1                      # bo (HIDDEN,)
M_BF = M_BO + 1                      # bf (HIDDEN,)
M_LN1G = M_BF + 1
M_LN1B = M_LN1G + 1
M_LN2G = M_LN1B + 1
M_LN2B = M_LN2G + 1
MISC_ROWS = M_LN2B + 1

# head/decoder slab row layout (lane width = VOCAB)
HD_DECW = 0                          # rows [0, HIDDEN): tied decoder weight (HIDDEN, VOCAB)
HD_HEADW = HIDDEN                    # rows [HIDDEN, 2*HIDDEN): head transform weight
HD_HB = 2 * HIDDEN                   # head transform bias (HIDDEN,)
HD_DB = HD_HB + 1                    # decoder bias (VOCAB,)
HD_HLNG = HD_DB + 1
HD_HLNB = HD_HLNG + 1
HD_ELNG = HD_HLNB + 1                # embedding LayerNorm gamma
HD_ELNB = HD_ELNG + 1                # embedding LayerNorm beta
HD_ROWS = HD_ELNB + 1

_VMEM = pl.BlockSpec(memory_space=pltpu.MemorySpace.VMEM)


# TODO(synk): HuggingFace BertForMaskedLM defaults to exact erf-GELU; tanh
# approximation is used here (EUP-friendly), top-k is normally unaffected.
def _gelu(x):
    c = jnp.float32(0.7978845608028654)  # sqrt(2/pi)
    return 0.5 * x * (1.0 + jnp.tanh(c * (x + 0.044715 * x * x * x)))


def _layernorm(x, g, b):
    mu = jnp.mean(x, axis=-1, keepdims=True)
    var = jnp.mean(jnp.square(x - mu), axis=-1, keepdims=True)
    return (x - mu) * jax.lax.rsqrt(var + LN_EPS) * g + b


# ---------------- fused Pallas kernel ----------------

def _fused_bert_kernel(x_ref, selkb_ref, wqkvb_ref, wo_ref, misc_ref, hd_ref,
                       out_ref, *, topk, batch, seq):
    D, H, I = HIDDEN, N_HEADS, INTER
    BS = batch * seq
    dn_qk = (((1,), (1,)), ((), ()))          # contract last dims (q . k^T, no transpose)

    # ---- embedding LayerNorm ----
    x = _layernorm(x_ref[...],
                   hd_ref[HD_ELNG:HD_ELNG + 1, 0:D],
                   hd_ref[HD_ELNB:HD_ELNB + 1, 0:D])          # (BS, D)

    bias = selkb_ref[0:BS, :]                 # (BS, BS) additive attention bias
    sel = selkb_ref[BS:BS + batch, :]         # (B, BS) one-hot masked-row selector

    # ---- encoder layers (unrolled, weights stacked over layers) ----
    for l in range(N_LAYERS):
        # fused QKV projection; each head slab 128-lane aligned, scale pre-folded into Q
        qkv = (jnp.dot(x, wqkvb_ref[l, 0:D, :],
                       preferred_element_type=jnp.float32)
               + wqkvb_ref[l, D:D + 1, :])                    # (BS, 6*128)
        attn = None
        for h in range(H):
            base = 3 * h * QKV_SLAB
            qh = qkv[:, base:base + QKV_SLAB]                 # (BS, 128), lanes >= Dh zero
            kh = qkv[:, base + QKV_SLAB:base + 2 * QKV_SLAB]
            vh = qkv[:, base + 2 * QKV_SLAB:base + 3 * QKV_SLAB]
            s = jax.lax.dot_general(qh, kh, dn_qk,
                                    preferred_element_type=jnp.float32) + bias
            s = s - jnp.max(s, axis=-1, keepdims=True)
            p = jnp.exp(s)
            p = p * pl.reciprocal(jnp.sum(p, axis=-1, keepdims=True), approx=True)
            ctx = jnp.dot(p, vh, preferred_element_type=jnp.float32)   # (BS, 128)
            part = jnp.dot(ctx, wo_ref[l * H + h],
                           preferred_element_type=jnp.float32)         # (BS, D)
            attn = part if attn is None else attn + part
        attn = attn + misc_ref[l, M_BO:M_BO + 1, 0:D]
        x = _layernorm(attn + x,
                       misc_ref[l, M_LN1G:M_LN1G + 1, 0:D],
                       misc_ref[l, M_LN1B:M_LN1B + 1, 0:D])
        inter = _gelu(jnp.dot(x, misc_ref[l, M_WI:M_WI + D, :],
                              preferred_element_type=jnp.float32)
                      + misc_ref[l, M_BI:M_BI + 1, :])
        ffo = (jnp.dot(inter, misc_ref[l, M_WF:M_WF + I, 0:D],
                       preferred_element_type=jnp.float32)
               + misc_ref[l, M_BF:M_BF + 1, 0:D])
        x = _layernorm(ffo + x,
                       misc_ref[l, M_LN2G:M_LN2G + 1, 0:D],
                       misc_ref[l, M_LN2B:M_LN2B + 1, 0:D])

    # ---- MLM prediction head, on the B masked rows only (select first) ----
    mrows = jnp.dot(sel, x, preferred_element_type=jnp.float32)        # (B, D)
    hh = _gelu(jnp.dot(mrows, hd_ref[HD_HEADW:HD_HEADW + D, 0:D],
                       preferred_element_type=jnp.float32)
               + hd_ref[HD_HB:HD_HB + 1, 0:D])
    hh = _layernorm(hh,
                    hd_ref[HD_HLNG:HD_HLNG + 1, 0:D],
                    hd_ref[HD_HLNB:HD_HLNB + 1, 0:D])
    logits = (jnp.dot(hh, hd_ref[HD_DECW:HD_DECW + D, :],
                      preferred_element_type=jnp.float32)
              + hd_ref[HD_DB:HD_DB + 1, :])                            # (B, V)

    # ---- top-k (vectorized over batch; iterative argmax, ties -> smallest idx) ----
    # Kept at max + min-of-where per k: packing (logit, idx) into one 32-bit sortable
    # key would truncate mantissa bits and can change tie/near-tie ordering.
    iota = jax.lax.broadcasted_iota(jnp.int32, (batch, VOCAB), 1)
    row = logits
    cols = []
    for _ in range(topk):
        mx = jnp.max(row, axis=-1, keepdims=True)                               # (B, 1)
        idx = jnp.min(jnp.where(row == mx, iota, VOCAB), axis=-1, keepdims=True)
        cols.append(idx)                                                        # (B, 1) i32
        row = jnp.where(iota == idx, jnp.float32(-jnp.inf), row)
    out_ref[...] = jnp.concatenate(cols, axis=-1)                               # (B, topk)


# ---------------- parameters (deterministic, synthetic) ----------------

def init_params(key):
    cnt = [0]

    def nk():
        cnt[0] += 1
        return jax.random.fold_in(key, cnt[0])

    def w(shape, scale=0.02):
        return scale * jax.random.normal(nk(), shape, jnp.float32)

    params = dict(
        word_emb=w((VOCAB, HIDDEN)),
        pos_emb=w((MAX_POS, HIDDEN)),
        type_emb=w((TYPE_VOCAB, HIDDEN)),
        emb_ln_g=jnp.ones((HIDDEN,), jnp.float32),
        emb_ln_b=jnp.zeros((HIDDEN,), jnp.float32),
        layers=[],
        head_w=w((HIDDEN, HIDDEN)),
        head_b=w((HIDDEN,)),
        head_ln_g=jnp.ones((HIDDEN,), jnp.float32),
        head_ln_b=jnp.zeros((HIDDEN,), jnp.float32),
        dec_b=w((VOCAB,)),
    )
    for _ in range(N_LAYERS):
        params["layers"].append(dict(
            wq=w((HIDDEN, HIDDEN)), bq=w((HIDDEN,)),
            wk=w((HIDDEN, HIDDEN)), bk=w((HIDDEN,)),
            wv=w((HIDDEN, HIDDEN)), bv=w((HIDDEN,)),
            wo=w((HIDDEN, HIDDEN)), bo=w((HIDDEN,)),
            ln1_g=jnp.ones((HIDDEN,), jnp.float32),
            ln1_b=jnp.zeros((HIDDEN,), jnp.float32),
            wi=w((HIDDEN, INTER)), bi=w((INTER,)),
            wf=w((INTER, HIDDEN)), bf=w((HIDDEN,)),
            ln2_g=jnp.ones((HIDDEN,), jnp.float32),
            ln2_b=jnp.zeros((HIDDEN,), jnp.float32),
        ))
    return params


def pack_params(params):
    """One-time packing (outside the jitted per-call path)."""
    L, D, H, Dh, I, V = N_LAYERS, HIDDEN, N_HEADS, HEAD_DIM, INTER, VOCAB
    scale = 1.0 / float(Dh) ** 0.5
    g = lambda a: np.asarray(a, np.float32)

    # QKV weights + bias; head-major 128-lane-aligned slabs; attention scale folded
    # into Q columns so the kernel does "+ bias" only.
    wqkvb = np.zeros((L, D + 1, 3 * H * QKV_SLAB), np.float32)
    wo = np.zeros((L * H, QKV_SLAB, D), np.float32)
    misc = np.zeros((L, MISC_ROWS, I), np.float32)
    for l, p in enumerate(params["layers"]):
        wq, wk, wv = g(p["wq"]), g(p["wk"]), g(p["wv"])
        bq, bk, bv = g(p["bq"]), g(p["bk"]), g(p["bv"])
        for h in range(H):
            c0, c1 = h * Dh, (h + 1) * Dh
            b0 = 3 * h * QKV_SLAB
            wqkvb[l, :D, b0:b0 + Dh] = wq[:, c0:c1] * scale
            wqkvb[l, D, b0:b0 + Dh] = bq[c0:c1] * scale
            wqkvb[l, :D, b0 + QKV_SLAB:b0 + QKV_SLAB + Dh] = wk[:, c0:c1]
            wqkvb[l, D, b0 + QKV_SLAB:b0 + QKV_SLAB + Dh] = bk[c0:c1]
            wqkvb[l, :D, b0 + 2 * QKV_SLAB:b0 + 2 * QKV_SLAB + Dh] = wv[:, c0:c1]
            wqkvb[l, D, b0 + 2 * QKV_SLAB:b0 + 2 * QKV_SLAB + Dh] = bv[c0:c1]
            wo[l * H + h, :Dh, :] = g(p["wo"])[c0:c1, :]
        misc[l, M_WI:M_WI + D, :I] = g(p["wi"])
        misc[l, M_WF:M_WF + I, :D] = g(p["wf"])
        misc[l, M_BI, :I] = g(p["bi"])
        misc[l, M_BO, :D] = g(p["bo"])
        misc[l, M_BF, :D] = g(p["bf"])
        misc[l, M_LN1G, :D] = g(p["ln1_g"]); misc[l, M_LN1B, :D] = g(p["ln1_b"])
        misc[l, M_LN2G, :D] = g(p["ln2_g"]); misc[l, M_LN2B, :D] = g(p["ln2_b"])

    hd = np.zeros((HD_ROWS, V), np.float32)
    hd[HD_DECW:HD_DECW + D, :] = g(params["word_emb"]).T   # tied decoder, transposed ONCE
    hd[HD_HEADW:HD_HEADW + D, :D] = g(params["head_w"])
    hd[HD_HB, :D] = g(params["head_b"])
    hd[HD_DB, :V] = g(params["dec_b"])
    hd[HD_HLNG, :D] = g(params["head_ln_g"]); hd[HD_HLNB, :D] = g(params["head_ln_b"])
    hd[HD_ELNG, :D] = g(params["emb_ln_g"]); hd[HD_ELNB, :D] = g(params["emb_ln_b"])

    return dict(
        word_emb=params["word_emb"], pos_emb=params["pos_emb"],
        type_emb=params["type_emb"],
        wqkvb=jnp.asarray(wqkvb), wo=jnp.asarray(wo),
        misc=jnp.asarray(misc), headdec=jnp.asarray(hd),
    )


# ---------------- forward pass (matches module.forward semantics) ----------------

@functools.partial(jax.jit, static_argnums=(4,))
def bert_mlm_forward(packed, input_mask, segment_ids, input_ids, topk_num, masked_idx):
    # dtype coercions mirror input_ids.long() / segment_ids.long() / input_mask.float()
    input_ids = input_ids.astype(jnp.int32)
    segment_ids = segment_ids.astype(jnp.int32)
    input_mask = input_mask.astype(jnp.float32)

    B, S = input_ids.shape
    BS = B * S

    # --- embeddings (gathers = JAX glue; sum + LN happen inside the kernel) ---
    we = packed["word_emb"][input_ids]                      # (B,S,D)
    pe = packed["pos_emb"][:S][None, :, :]                  # (1,S,D)
    te = packed["type_emb"][segment_ids]                    # (B,S,D)
    x_emb = (we + pe + te).reshape(BS, HIDDEN)

    # --- additive attention bias: padded keys AND cross-batch pairs get -10000
    #     (identical treatment to HF's extended attention mask). The cross-batch
    #     part is a compile-time constant; only the key bias add is per-call. ---
    batch_ids = jnp.repeat(jnp.arange(B), S)
    cross = jnp.where(batch_ids[:, None] == batch_ids[None, :],
                      jnp.float32(0.0), jnp.float32(-10000.0))
    key_bias = ((1.0 - input_mask) * jnp.float32(-10000.0)).reshape(1, BS)
    bias_full = cross + key_bias                            # (BS, BS)

    # --- one-hot selector for the masked rows (decoder only produces B logit rows) ---
    sel = jax.nn.one_hot(jnp.arange(B) * S + masked_idx.astype(jnp.int32),
                         BS, dtype=jnp.float32)             # (B, BS)
    selkb = jnp.concatenate([bias_full, sel], axis=0)       # (BS + B, BS), one operand

    kernel = functools.partial(_fused_bert_kernel, topk=int(topk_num), batch=B, seq=S)
    indexs = pl.pallas_call(
        kernel,
        out_shape=jax.ShapeDtypeStruct((B, int(topk_num)), jnp.int32),
        in_specs=[_VMEM] * 6,
        out_specs=_VMEM,
    )(x_emb, selkb, packed["wqkvb"], packed["wo"], packed["misc"], packed["headdec"])
    return indexs


if __name__ == "__main__":
    params = init_params(jax.random.PRNGKey(0))
    packed = pack_params(params)          # one-time packing, not in the per-call path

    B, S = 2, 8
    topk_num = 5
    kid = jax.random.PRNGKey(0)
    input_ids = jax.random.randint(jax.random.fold_in(kid, 100), (B, S), 0, VOCAB,
                                   dtype=jnp.int32)
    segment_ids = jnp.zeros((B, S), jnp.int32)
    input_mask = jnp.array([[1, 1, 1, 1, 1, 1, 1, 1],
                            [1, 1, 1, 1, 1, 1, 0, 0]], jnp.float32)
    masked_idx = jnp.array([2, 4], jnp.int32)

    indexs = bert_mlm_forward(packed, input_mask, segment_ids, input_ids,
                              topk_num, masked_idx)
    indexs = jax.block_until_ready(indexs)

    # TODO(synk): tokenizer.convert_ids_to_tokens is host-side string vocab lookup
    # (no Pallas/JAX equivalent); emit synthetic token strings instead.
    tokens = [[f"<tok_{int(t)}>" for t in row] for row in indexs]
    index_list = [indexs[i] for i in range(B)]

    assert indexs.shape == (B, topk_num)
    assert len(tokens) == B and len(tokens[0]) == topk_num
    assert len(index_list) == B
    print("KERNEL_OK")
</pallas_src>

<mosaic_0001>
module attributes {stable_mosaic.version = 11 : i64} {
  func.func @_fused_bert_kernel(%arg0: memref<16x32xf32, #tpu.memory_space<vmem>>, %arg1: memref<18x16xf32, #tpu.memory_space<vmem>>, %arg2: memref<2x33x768xf32, #tpu.memory_space<vmem>>, %arg3: memref<4x128x32xf32, #tpu.memory_space<vmem>>, %arg4: memref<2x103x64xf32, #tpu.memory_space<vmem>>, %arg5: memref<70x256xf32, #tpu.memory_space<vmem>>, %arg6: memref<2x5xi32, #tpu.memory_space<vmem>>) attributes {dimension_semantics = [], scalar_prefetch = 0 : i64, scratch_operands = 0 : i64, tpu.core_type = #tpu.core_type<tc>} {
    %c0 = arith.constant 0 : index
    %c0_0 = arith.constant 0 : index
    %0 = vector.load %arg0[%c0, %c0_0] : memref<16x32xf32, #tpu.memory_space<vmem>>, vector<16x32xf32>
    %c68 = arith.constant 68 : index
    %c0_1 = arith.constant 0 : index
    %1 = vector.load %arg5[%c68, %c0_1] : memref<70x256xf32, #tpu.memory_space<vmem>>, vector<1x32xf32>
    %c69 = arith.constant 69 : index
    %c0_2 = arith.constant 0 : index
    %2 = vector.load %arg5[%c69, %c0_2] : memref<70x256xf32, #tpu.memory_space<vmem>>, vector<1x32xf32>
    %cst = arith.constant dense<0.000000e+00> : vector<16xf32>
    %3 = vector.multi_reduction <add>, %0, %cst [1] : vector<16x32xf32> to vector<16xf32>
    %4 = vector.shape_cast %3 : vector<16xf32> to vector<16x1xf32>
    %cst_3 = arith.constant 3.200000e+01 : f32
    %5 = vector.broadcast %cst_3 : f32 to vector<16x1xf32>
    %6 = arith.divf %4, %5 : vector<16x1xf32>
    %7 = vector.broadcast %6 : vector<16x1xf32> to vector<16x32xf32>
    %8 = arith.subf %0, %7 : vector<16x32xf32>
    %9 = arith.mulf %8, %8 : vector<16x32xf32>
    %cst_4 = arith.constant dense<0.000000e+00> : vector<16xf32>
    %10 = vector.multi_reduction <add>, %9, %cst_4 [1] : vector<16x32xf32> to vector<16xf32>
    %11 = vector.shape_cast %10 : vector<16xf32> to vector<16x1xf32>
    %cst_5 = arith.constant 3.200000e+01 : f32
    %12 = vector.broadcast %cst_5 : f32 to vector<16x1xf32>
    %13 = arith.divf %11, %12 : vector<16x1xf32>
    %14 = vector.broadcast %6 : vector<16x1xf32> to vector<16x32xf32>
    %15 = arith.subf %0, %14 : vector<16x32xf32>
    %cst_6 = arith.constant 9.99999996E-13 : f32
    %16 = vector.broadcast %cst_6 : f32 to vector<16x1xf32>
    %17 = arith.addf %13, %16 : vector<16x1xf32>
    %18 = math.rsqrt %17 : vector<16x1xf32>
    %19 = vector.broadcast %18 : vector<16x1xf32> to vector<16x32xf32>
    %20 = arith.mulf %15, %19 : vector<16x32xf32>
    %21 = vector.broadcast %1 : vector<1x32xf32> to vector<16x32xf32>
    %22 = arith.mulf %20, %21 : vector<16x32xf32>
    %23 = vector.broadcast %2 : vector<1x32xf32> to vector<16x32xf32>
    %24 = arith.addf %22, %23 : vector<16x32xf32>
    %c0_7 = arith.constant 0 : index
    %c0_8 = arith.constant 0 : index
    %25 = vector.load %arg1[%c0_7, %c0_8] : memref<18x16xf32, #tpu.memory_space<vmem>>, vector<16x16xf32>
    %c16 = arith.constant 16 : index
    %c0_9 = arith.constant 0 : index
    %26 = vector.load %arg1[%c16, %c0_9] : memref<18x16xf32, #tpu.memory_space<vmem>>, vector<2x16xf32>
    %c0_10 = arith.constant 0 : index
    %c0_11 = arith.constant 0 : index
    %c0_12 = arith.constant 0 : index
    %27 = vector.load %arg2[%c0_10, %c0_11, %c0_12] : memref<2x33x768xf32, #tpu.memory_space<vmem>>, vector<1x32x768xf32>
    %28 = vector.shape_cast %27 : vector<1x32x768xf32> to vector<32x768xf32>
    %cst_13 = arith.constant dense<0.000000e+00> : vector<16x768xf32>
    %29 = tpu.matmul %24, %28, %cst_13 {dimension_numbers = #tpu.dot_dimension_numbers<[1], [0], [0], [1], [0, 0, 1, 1], [], []>} : vector<16x32xf32>, vector<32x768xf32>, vector<16x768xf32> -> vector<16x768xf32>
    %c0_14 = arith.constant 0 : index
    %c32 = arith.constant 32 : index
    %c0_15 = arith.constant 0 : index
    %30 = vector.load %arg2[%c0_14, %c32, %c0_15] : memref<2x33x768xf32, #tpu.memory_space<vmem>>, vector<1x1x768xf32>
    %31 = vector.shape_cast %30 : vector<1x1x768xf32> to vector<1x768xf32>
    %32 = vector.broadcast %31 : vector<1x768xf32> to vector<16x768xf32>
    %33 = arith.addf %29, %32 : vector<16x768xf32>
    %34 = vector.extract_strided_slice %33 {offsets = [0, 0], sizes = [16, 128], strides = [1, 1]} : vector<16x768xf32> to vector<16x128xf32>
    %35 = vector.extract_strided_slice %33 {offsets = [0, 128], sizes = [16, 128], strides = [1, 1]} : vector<16x768xf32> to vector<16x128xf32>
    %36 = vector.extract_strided_slice %33 {offsets = [0, 256], sizes = [16, 128], strides = [1, 1]} : vector<16x768xf32> to vector<16x128xf32>
    %cst_16 = arith.constant dense<0.000000e+00> : vector<16x16xf32>
    %37 = tpu.matmul %34, %35, %cst_16 {dimension_numbers = #tpu.dot_dimension_numbers<[1], [1], [0], [0], [0, 0, 1, 0], [], []>} : vector<16x128xf32>, vector<16x128xf32>, vector<16x16xf32> -> vector<16x16xf32>
    %38 = arith.addf %37, %25 : vector<16x16xf32>
    %cst_17 = arith.constant dense<0xFF800000> : vector<16xf32>
    %39 = vector.multi_reduction <maximumf>, %38, %cst_17 [1] : vector<16x16xf32> to vector<16xf32>
    %40 = vector.shape_cast %39 : vector<16xf32> to vector<16x1xf32>
    %41 = vector.broadcast %40 : vector<16x1xf32> to vector<16x16xf32>
    %42 = arith.subf %38, %41 : vector<16x16xf32>
    %43 = math.exp %42 : vector<16x16xf32>
    %cst_18 = arith.constant dense<0.000000e+00> : vector<16xf32>
    %44 = vector.multi_reduction <add>, %43, %cst_18 [1] : vector<16x16xf32> to vector<16xf32>
    %45 = vector.shape_cast %44 : vector<16xf32> to vector<16x1xf32>
    %46 = tpu.reciprocal %45 {approx = true} : vector<16x1xf32> -> vector<16x1xf32>
    %47 = vector.broadcast %46 : vector<16x1xf32> to vector<16x16xf32>
    %48 = arith.mulf %43, %47 : vector<16x16xf32>
    %cst_19 = arith.constant dense<0.000000e+00> : vector<16x128xf32>
    %49 = tpu.matmul %48, %36, %cst_19 {dimension_numbers = #tpu.dot_dimension_numbers<[1], [0], [0], [1], [0, 0, 1, 1], [], []>} : vector<16x16xf32>, vector<16x128xf32>, vector<16x128xf32> -> vector<16x128xf32>
    %c0_20 = arith.constant 0 : index
    %c0_21 = arith.constant 0 : index
    %c0_22 = arith.constant 0 : index
    %50 = vector.load %arg3[%c0_20, %c0_21, %c0_22] : memref<4x128x32xf32, #tpu.memory_space<vmem>>, vector<1x128x32xf32>
    %51 = vector.shape_cast %50 : vector<1x128x32xf32> to vector<128x32xf32>
    %cst_23 = arith.constant dense<0.000000e+00> : vector<16x32xf32>
    %52 = tpu.matmul %49, %51, %cst_23 {dimension_numbers = #tpu.dot_dimension_numbers<[1], [0], [0], [1], [0, 0, 1, 1], [], []>} : vector<16x128xf32>, vector<128x32xf32>, vector<16x32xf32> -> vector<16x32xf32>
    %53 = vector.extract_strided_slice %33 {offsets = [0, 384], sizes = [16, 128], strides = [1, 1]} : vector<16x768xf32> to vector<16x128xf32>
    %54 = vector.extract_strided_slice %33 {offsets = [0, 512], sizes = [16, 128], strides = [1, 1]} : vector<16x768xf32> to vector<16x128xf32>
    %55 = vector.extract_strided_slice %33 {offsets = [0, 640], sizes = [16, 128], strides = [1, 1]} : vector<16x768xf32> to vector<16x128xf32>
    %cst_24 = arith.constant dense<0.000000e+00> : vector<16x16xf32>
    %56 = tpu.matmul %53, %54, %cst_24 {dimension_numbers = #tpu.dot_dimension_numbers<[1], [1], [0], [0], [0, 0, 1, 0], [], []>} : vector<16x128xf32>, vector<16x128xf32>, vector<16x16xf32> -> vector<16x16xf32>
    %57 = arith.addf %56, %25 : vector<16x16xf32>
    %cst_25 = arith.constant dense<0xFF800000> : vector<16xf32>
    %58 = vector.multi_reduction <maximumf>, %57, %cst_25 [1] : vector<16x16xf32> to vector<16xf32>
    %59 = vector.shape_cast %58 : vector<16xf32> to vector<16x1xf32>
    %60 = vector.broadcast %59 : vector<16x1xf32> to vector<16x16xf32>
    %61 = arith.subf %57, %60 : vector<16x16xf32>
    %62 = math.exp %61 : vector<16x16xf32>
    %cst_26 = arith.constant dense<0.000000e+00> : vector<16xf32>
    %63 = vector.multi_reduction <add>, %62, %cst_26 [1] : vector<16x16xf32> to vector<16xf32>
    %64 = vector.shape_cast %63 : vector<16xf32> to vector<16x1xf32>
    %65 = tpu.reciprocal %64 {approx = true} : vector<16x1xf32> -> vector<16x1xf32>
    %66 = vector.broadcast %65 : vector<16x1xf32> to vector<16x16xf32>
    %67 = arith.mulf %62, %66 : vector<16x16xf32>
    %cst_27 = arith.constant dense<0.000000e+00> : vector<16x128xf32>
    %68 = tpu.matmul %67, %55, %cst_27 {dimension_numbers = #tpu.dot_dimension_numbers<[1], [0], [0], [1], [0, 0, 1, 1], [], []>} : vector<16x16xf32>, vector<16x128xf32>, vector<16x128xf32> -> vector<16x128xf32>
    %c1 = arith.constant 1 : index
    %c0_28 = arith.constant 0 : index
    %c0_29 = arith.constant 0 : index
    %69 = vector.load %arg3[%c1, %c0_28, %c0_29] : memref<4x128x32xf32, #tpu.memory_space<vmem>>, vector<1x128x32xf32>
    %70 = vector.shape_cast %69 : vector<1x128x32xf32> to vector<128x32xf32>
    %cst_30 = arith.constant dense<0.000000e+00> : vector<16x32xf32>
    %71 = tpu.matmul %68, %70, %cst_30 {dimension_numbers = #tpu.dot_dimension_numbers<[1], [0], [0], [1], [0, 0, 1, 1], [], []>} : vector<16x128xf32>, vector<128x32xf32>, vector<16x32xf32> -> vector<16x32xf32>
    %72 = arith.addf %52, %71 : vector<16x32xf32>
    %c0_31 = arith.constant 0 : index
    %c97 = arith.constant 97 : index
    %c0_32 = arith.constant 0 : index
    %73 = vector.load %arg4[%c0_31, %c97, %c0_32] : memref<2x103x64xf32, #tpu.memory_space<vmem>>, vector<1x1x32xf32>
    %74 = vector.shape_cast %73 : vector<1x1x32xf32> to vector<1x32xf32>
    %75 = vector.broadcast %74 : vector<1x32xf32> to vector<16x32xf32>
    %76 = arith.addf %72, %75 : vector<16x32xf32>
    %77 = arith.addf %76, %24 : vector<16x32xf32>
    %c0_33 = arith.constant 0 : index
    %c99 = arith.constant 99 : index
    %c0_34 = arith.constant 0 : index
    %78 = vector.load %arg4[%c0_33, %c99, %c0_34] : memref<2x103x64xf32, #tpu.memory_space<vmem>>, vector<1x1x32xf32>
    %79 = vector.shape_cast %78 : vector<1x1x32xf32> to vector<1x32xf32>
    %c0_35 = arith.constant 0 : index
    %c100 = arith.constant 100 : index
    %c0_36 = arith.constant 0 : index
    %80 = vector.load %arg4[%c0_35, %c100, %c0_36] : memref<2x103x64xf32, #tpu.memory_space<vmem>>, vector<1x1x32xf32>
    %81 = vector.shape_cast %80 : vector<1x1x32xf32> to vector<1x32xf32>
    %cst_37 = arith.constant dense<0.000000e+00> : vector<16xf32>
    %82 = vector.multi_reduction <add>, %77, %cst_37 [1] : vector<16x32xf32> to vector<16xf32>
    %83 = vector.shape_cast %82 : vector<16xf32> to vector<16x1xf32>
    %cst_38 = arith.constant 3.200000e+01 : f32
    %84 = vector.broadcast %cst_38 : f32 to vector<16x1xf32>
    %85 = arith.divf %83, %84 : vector<16x1xf32>
    %86 = vector.broadcast %85 : vector<16x1xf32> to vector<16x32xf32>
    %87 = arith.subf %77, %86 : vector<16x32xf32>
    %88 = arith.mulf %87, %87 : vector<16x32xf32>
    %cst_39 = arith.constant dense<0.000000e+00> : vector<16xf32>
    %89 = vector.multi_reduction <add>, %88, %cst_39 [1] : vector<16x32xf32> to vector<16xf32>
    %90 = vector.shape_cast %89 : vector<16xf32> to vector<16x1xf32>
    %cst_40 = arith.constant 3.200000e+01 : f32
    %91 = vector.broadcast %cst_40 : f32 to vector<16x1xf32>
    %92 = arith.divf %90, %91 : vector<16x1xf32>
    %93 = vector.broadcast %85 : vector<16x1xf32> to vector<16x32xf32>
    %94 = arith.subf %77, %93 : vector<16x32xf32>
    %cst_41 = arith.constant 9.99999996E-13 : f32
    %95 = vector.broadcast %cst_41 : f32 to vector<16x1xf32>
    %96 = arith.addf %92, %95 : vector<16x1xf32>
    %97 = math.rsqrt %96 : vector<16x1xf32>
    %98 = vector.broadcast %97 : vector<16x1xf32> to vector<16x32xf32>
    %99 = arith.mulf %94, %98 : vector<16x32xf32>
    %100 = vector.broadcast %79 : vector<1x32xf32> to vector<16x32xf32>
    %101 = arith.mulf %99, %100 : vector<16x32xf32>
    %102 = vector.broadcast %81 : vector<1x32xf32> to vector<16x32xf32>
    %103 = arith.addf %101, %102 : vector<16x32xf32>
    %c0_42 = arith.constant 0 : index
    %c0_43 = arith.constant 0 : index
    %c0_44 = arith.constant 0 : index
    %104 = vector.load %arg4[%c0_42, %c0_43, %c0_44] : memref<2x103x64xf32, #tpu.memory_space<vmem>>, vector<1x32x64xf32>
    %105 = vector.shape_cast %104 : vector<1x32x64xf32> to vector<32x64xf32>
    %cst_45 = arith.constant dense<0.000000e+00> : vector<16x64xf32>
    %106 = tpu.matmul %103, %105, %cst_45 {dimension_numbers = #tpu.dot_dimension_numbers<[1], [0], [0], [1], [0, 0, 1, 1], [], []>} : vector<16x32xf32>, vector<32x64xf32>, vector<16x64xf32> -> vector<16x64xf32>
    %c0_46 = arith.constant 0 : index
    %c96 = arith.constant 96 : index
    %c0_47 = arith.constant 0 : index
    %107 = vector.load %arg4[%c0_46, %c96, %c0_47] : memref<2x103x64xf32, #tpu.memory_space<vmem>>, vector<1x1x64xf32>
    %108 = vector.shape_cast %107 : vector<1x1x64xf32> to vector<1x64xf32>
    %109 = vector.broadcast %108 : vector<1x64xf32> to vector<16x64xf32>
    %110 = arith.addf %106, %109 : vector<16x64xf32>
    %cst_48 = arith.constant 5.000000e-01 : f32
    %111 = vector.broadcast %cst_48 : f32 to vector<16x64xf32>
    %112 = arith.mulf %111, %110 : vector<16x64xf32>
    %cst_49 = arith.constant 4.471500e-02 : f32
    %113 = vector.broadcast %cst_49 : f32 to vector<16x64xf32>
    %114 = arith.mulf %113, %110 : vector<16x64xf32>
    %115 = arith.mulf %114, %110 : vector<16x64xf32>
    %116 = arith.mulf %115, %110 : vector<16x64xf32>
    %117 = arith.addf %110, %116 : vector<16x64xf32>
    %cst_50 = arith.constant 0.797884583 : f32
    %118 = vector.broadcast %cst_50 : f32 to vector<16x64xf32>
    %119 = arith.mulf %118, %117 : vector<16x64xf32>
    %120 = math.tanh %119 : vector<16x64xf32>
    %cst_51 = arith.constant 1.000000e+00 : f32
    %121 = vector.broadcast %cst_51 : f32 to vector<16x64xf32>
    %122 = arith.addf %121, %120 : vector<16x64xf32>
    %123 = arith.mulf %112, %122 : vector<16x64xf32>
    %c0_52 = arith.constant 0 : index
    %c32_53 = arith.constant 32 : index
    %c0_54 = arith.constant 0 : index
    %124 = vector.load %arg4[%c0_52, %c32_53, %c0_54] : memref<2x103x64xf32, #tpu.memory_space<vmem>>, vector<1x64x32xf32>
    %125 = vector.shape_cast %124 : vector<1x64x32xf32> to vector<64x32xf32>
    %cst_55 = arith.constant dense<0.000000e+00> : vector<16x32xf32>
    %126 = tpu.matmul %123, %125, %cst_55 {dimension_numbers = #tpu.dot_dimension_numbers<[1], [0], [0], [1], [0, 0, 1, 1], [], []>} : vector<16x64xf32>, vector<64x32xf32>, vector<16x32xf32> -> vector<16x32xf32>
    %c0_56 = arith.constant 0 : index
    %c98 = arith.constant 98 : index
    %c0_57 = arith.constant 0 : index
    %127 = vector.load %arg4[%c0_56, %c98, %c0_57] : memref<2x103x64xf32, #tpu.memory_space<vmem>>, vector<1x1x32xf32>
    %128 = vector.shape_cast %127 : vector<1x1x32xf32> to vector<1x32xf32>
    %129 = vector.broadcast %128 : vector<1x32xf32> to vector<16x32xf32>
    %130 = arith.addf %126, %129 : vector<16x32xf32>
    %131 = arith.addf %130, %103 : vector<16x32xf32>
    %c0_58 = arith.constant 0 : index
    %c101 = arith.constant 101 : index
    %c0_59 = arith.constant 0 : index
    %132 = vector.load %arg4[%c0_58, %c101, %c0_59] : memref<2x103x64xf32, #tpu.memory_space<vmem>>, vector<1x1x32xf32>
    %133 = vector.shape_cast %132 : vector<1x1x32xf32> to vector<1x32xf32>
    %c0_60 = arith.constant 0 : index
    %c102 = arith.constant 102 : index
    %c0_61 = arith.constant 0 : index
    %134 = vector.load %arg4[%c0_60, %c102, %c0_61] : memref<2x103x64xf32, #tpu.memory_space<vmem>>, vector<1x1x32xf32>
    %135 = vector.shape_cast %134 : vector<1x1x32xf32> to vector<1x32xf32>
    %cst_62 = arith.constant dense<0.000000e+00> : vector<16xf32>
    %136 = vector.multi_reduction <add>, %131, %cst_62 [1] : vector<16x32xf32> to vector<16xf32>
    %137 = vector.shape_cast %136 : vector<16xf32> to vector<16x1xf32>
    %cst_63 = arith.constant 3.200000e+01 : f32
    %138 = vector.broadcast %cst_63 : f32 to vector<16x1xf32>
    %139 = arith.divf %137, %138 : vector<16x1xf32>
    %140 = vector.broadcast %139 : vector<16x1xf32> to vector<16x32xf32>
    %141 = arith.subf %131, %140 : vector<16x32xf32>
    %142 = arith.mulf %141, %141 : vector<16x32xf32>
    %cst_64 = arith.constant dense<0.000000e+00> : vector<16xf32>
    %143 = vector.multi_reduction <add>, %142, %cst_64 [1] : vector<16x32xf32> to vector<16xf32>
    %144 = vector.shape_cast %143 : vector<16xf32> to vector<16x1xf32>
    %cst_65 = arith.constant 3.200000e+01 : f32
    %145 = vector.broadcast %cst_65 : f32 to vector<16x1xf32>
    %146 = arith.divf %144, %145 : vector<16x1xf32>
    %147 = vector.broadcast %139 : vector<16x1xf32> to vector<16x32xf32>
    %148 = arith.subf %131, %147 : vector<16x32xf32>
    %cst_66 = arith.constant 9.99999996E-13 : f32
    %149 = vector.broadcast %cst_66 : f32 to vector<16x1xf32>
    %150 = arith.addf %146, %149 : vector<16x1xf32>
    %151 = math.rsqrt %150 : vector<16x1xf32>
    %152 = vector.broadcast %151 : vector<16x1xf32> to vector<16x32xf32>
    %153 = arith.mulf %148, %152 : vector<16x32xf32>
    %154 = vector.broadcast %133 : vector<1x32xf32> to vector<16x32xf32>
    %155 = arith.mulf %153, %154 : vector<16x32xf32>
    %156 = vector.broadcast %135 : vector<1x32xf32> to vector<16x32xf32>
    %157 = arith.addf %155, %156 : vector<16x32xf32>
    %c1_67 = arith.constant 1 : index
    %c0_68 = arith.constant 0 : index
    %c0_69 = arith.constant 0 : index
    %158 = vector.load %arg2[%c1_67, %c0_68, %c0_69] : memref<2x33x768xf32, #tpu.memory_space<vmem>>, vector<1x32x768xf32>
    %159 = vector.shape_cast %158 : vector<1x32x768xf32> to vector<32x768xf32>
    %cst_70 = arith.constant dense<0.000000e+00> : vector<16x768xf32>
    %160 = tpu.matmul %157, %159, %cst_70 {dimension_numbers = #tpu.dot_dimension_numbers<[1], [0], [0], [1], [0, 0, 1, 1], [], []>} : vector<16x32xf32>, vector<32x768xf32>, vector<16x768xf32> -> vector<16x768xf32>
    %c1_71 = arith.constant 1 : index
    %c32_72 = arith.constant 32 : index
    %c0_73 = arith.constant 0 : index
    %161 = vector.load %arg2[%c1_71, %c32_72, %c0_73] : memref<2x33x768xf32, #tpu.memory_space<vmem>>, vector<1x1x768xf32>
    %162 = vector.shape_cast %161 : vector<1x1x768xf32> to vector<1x768xf32>
    %163 = vector.broadcast %162 : vector<1x768xf32> to vector<16x768xf32>
    %164 = arith.addf %160, %163 : vector<16x768xf32>
    %165 = vector.extract_strided_slice %164 {offsets = [0, 0], sizes = [16, 128], strides = [1, 1]} : vector<16x768xf32> to vector<16x128xf32>
    %166 = vector.extract_strided_slice %164 {offsets = [0, 128], sizes = [16, 128], strides = [1, 1]} : vector<16x768xf32> to vector<16x128xf32>
    %167 = vector.extract_strided_slice %164 {offsets = [0, 256], sizes = [16, 128], strides = [1, 1]} : vector<16x768xf32> to vector<16x128xf32>
    %cst_74 = arith.constant dense<0.000000e+00> : vector<16x16xf32>
    %168 = tpu.matmul %165, %166, %cst_74 {dimension_numbers = #tpu.dot_dimension_numbers<[1], [1], [0], [0], [0, 0, 1, 0], [], []>} : vector<16x128xf32>, vector<16x128xf32>, vector<16x16xf32> -> vector<16x16xf32>
    %169 = arith.addf %168, %25 : vector<16x16xf32>
    %cst_75 = arith.constant dense<0xFF800000> : vector<16xf32>
    %170 = vector.multi_reduction <maximumf>, %169, %cst_75 [1] : vector<16x16xf32> to vector<16xf32>
    %171 = vector.shape_cast %170 : vector<16xf32> to vector<16x1xf32>
    %172 = vector.broadcast %171 : vector<16x1xf32> to vector<16x16xf32>
    %173 = arith.subf %169, %172 : vector<16x16xf32>
    %174 = math.exp %173 : vector<16x16xf32>
    %cst_76 = arith.constant dense<0.000000e+00> : vector<16xf32>
    %175 = vector.multi_reduction <add>, %174, %cst_76 [1] : vector<16x16xf32> to vector<16xf32>
    %176 = vector.shape_cast %175 : vector<16xf32> to vector<16x1xf32>
    %177 = tpu.reciprocal %176 {approx = true} : vector<16x1xf32> -> vector<16x1xf32>
    %178 = vector.broadcast %177 : vector<16x1xf32> to vector<16x16xf32>
    %179 = arith.mulf %174, %178 : vector<16x16xf32>
    %cst_77 = arith.constant dense<0.000000e+00> : vector<16x128xf32>
    %180 = tpu.matmul %179, %167, %cst_77 {dimension_numbers = #tpu.dot_dimension_numbers<[1], [0], [0], [1], [0, 0, 1, 1], [], []>} : vector<16x16xf32>, vector<16x128xf32>, vector<16x128xf32> -> vector<16x128xf32>
    %c2 = arith.constant 2 : index
    %c0_78 = arith.constant 0 : index
    %c0_79 = arith.constant 0 : index
    %181 = vector.load %arg3[%c2, %c0_78, %c0_79] : memref<4x128x32xf32, #tpu.memory_space<vmem>>, vector<1x128x32xf32>
    %182 = vector.shape_cast %181 : vector<1x128x32xf32> to vector<128x32xf32>
    %cst_80 = arith.constant dense<0.000000e+00> : vector<16x32xf32>
    %183 = tpu.matmul %180, %182, %cst_80 {dimension_numbers = #tpu.dot_dimension_numbers<[1], [0], [0], [1], [0, 0, 1, 1], [], []>} : vector<16x128xf32>, vector<128x32xf32>, vector<16x32xf32> -> vector<16x32xf32>
    %184 = vector.extract_strided_slice %164 {offsets = [0, 384], sizes = [16, 128], strides = [1, 1]} : vector<16x768xf32> to vector<16x128xf32>
    %185 = vector.extract_strided_slice %164 {offsets = [0, 512], sizes = [16, 128], strides = [1, 1]} : vector<16x768xf32> to vector<16x128xf32>
    %186 = vector.extract_strided_slice %164 {offsets = [0, 640], sizes = [16, 128], strides = [1, 1]} : vector<16x768xf32> to vector<16x128xf32>
    %cst_81 = arith.constant dense<0.000000e+00> : vector<16x16xf32>
    %187 = tpu.matmul %184, %185, %cst_81 {dimension_numbers = #tpu.dot_dimension_numbers<[1], [1], [0], [0], [0, 0, 1, 0], [], []>} : vector<16x128xf32>, vector<16x128xf32>, vector<16x16xf32> -> vector<16x16xf32>
    %188 = arith.addf %187, %25 : vector<16x16xf32>
    %cst_82 = arith.constant dense<0xFF800000> : vector<16xf32>
    %189 = vector.multi_reduction <maximumf>, %188, %cst_82 [1] : vector<16x16xf32> to vector<16xf32>
    %190 = vector.shape_cast %189 : vector<16xf32> to vector<16x1xf32>
    %191 = vector.broadcast %190 : vector<16x1xf32> to vector<16x16xf32>
    %192 = arith.subf %188, %191 : vector<16x16xf32>
    %193 = math.exp %192 : vector<16x16xf32>
    %cst_83 = arith.constant dense<0.000000e+00> : vector<16xf32>
    %194 = vector.multi_reduction <add>, %193, %cst_83 [1] : vector<16x16xf32> to vector<16xf32>
    %195 = vector.shape_cast %194 : vector<16xf32> to vector<16x1xf32>
    %196 = tpu.reciprocal %195 {approx = true} : vector<16x1xf32> -> vector<16x1xf32>
    %197 = vector.broadcast %196 : vector<16x1xf32> to vector<16x16xf32>
    %198 = arith.mulf %193, %197 : vector<16x16xf32>
    %cst_84 = arith.constant dense<0.000000e+00> : vector<16x128xf32>
    %199 = tpu.matmul %198, %186, %cst_84 {dimension_numbers = #tpu.dot_dimension_numbers<[1], [0], [0], [1], [0, 0, 1, 1], [], []>} : vector<16x16xf32>, vector<16x128xf32>, vector<16x128xf32> -> vector<16x128xf32>
    %c3 = arith.constant 3 : index
    %c0_85 = arith.constant 0 : index
    %c0_86 = arith.constant 0 : index
    %200 = vector.load %arg3[%c3, %c0_85, %c0_86] : memref<4x128x32xf32, #tpu.memory_space<vmem>>, vector<1x128x32xf32>
    %201 = vector.shape_cast %200 : vector<1x128x32xf32> to vector<128x32xf32>
    %cst_87 = arith.constant dense<0.000000e+00> : vector<16x32xf32>
    %202 = tpu.matmul %199, %201, %cst_87 {dimension_numbers = #tpu.dot_dimension_numbers<[1], [0], [0], [1], [0, 0, 1, 1], [], []>} : vector<16x128xf32>, vector<128x32xf32>, vector<16x32xf32> -> vector<16x32xf32>
    %203 = arith.addf %183, %202 : vector<16x32xf32>
    %c1_88 = arith.constant 1 : index
    %c97_89 = arith.constant 97 : index
    %c0_90 = arith.constant 0 : index
    %204 = vector.load %arg4[%c1_88, %c97_89, %c0_90] : memref<2x103x64xf32, #tpu.memory_space<vmem>>, vector<1x1x32xf32>
    %205 = vector.shape_cast %204 : vector<1x1x32xf32> to vector<1x32xf32>
    %206 = vector.broadcast %205 : vector<1x32xf32> to vector<16x32xf32>
    %207 = arith.addf %203, %206 : vector<16x32xf32>
    %208 = arith.addf %207, %157 : vector<16x32xf32>
    %c1_91 = arith.constant 1 : index
    %c99_92 = arith.constant 99 : index
    %c0_93 = arith.constant 0 : index
    %209 = vector.load %arg4[%c1_91, %c99_92, %c0_93] : memref<2x103x64xf32, #tpu.memory_space<vmem>>, vector<1x1x32xf32>
    %210 = vector.shape_cast %209 : vector<1x1x32xf32> to vector<1x32xf32>
    %c1_94 = arith.constant 1 : index
    %c100_95 = arith.constant 100 : index
    %c0_96 = arith.constant 0 : index
    %211 = vector.load %arg4[%c1_94, %c100_95, %c0_96] : memref<2x103x64xf32, #tpu.memory_space<vmem>>, vector<1x1x32xf32>
    %212 = vector.shape_cast %211 : vector<1x1x32xf32> to vector<1x32xf32>
    %cst_97 = arith.constant dense<0.000000e+00> : vector<16xf32>
    %213 = vector.multi_reduction <add>, %208, %cst_97 [1] : vector<16x32xf32> to vector<16xf32>
    %214 = vector.shape_cast %213 : vector<16xf32> to vector<16x1xf32>
    %cst_98 = arith.constant 3.200000e+01 : f32
    %215 = vector.broadcast %cst_98 : f32 to vector<16x1xf32>
    %216 = arith.divf %214, %215 : vector<16x1xf32>
    %217 = vector.broadcast %216 : vector<16x1xf32> to vector<16x32xf32>
    %218 = arith.subf %208, %217 : vector<16x32xf32>
    %219 = arith.mulf %218, %218 : vector<16x32xf32>
    %cst_99 = arith.constant dense<0.000000e+00> : vector<16xf32>
    %220 = vector.multi_reduction <add>, %219, %cst_99 [1] : vector<16x32xf32> to vector<16xf32>
    %221 = vector.shape_cast %220 : vector<16xf32> to vector<16x1xf32>
    %cst_100 = arith.constant 3.200000e+01 : f32
    %222 = vector.broadcast %cst_100 : f32 to vector<16x1xf32>
    %223 = arith.divf %221, %222 : vector<16x1xf32>
    %224 = vector.broadcast %216 : vector<16x1xf32> to vector<16x32xf32>
    %225 = arith.subf %208, %224 : vector<16x32xf32>
    %cst_101 = arith.constant 9.99999996E-13 : f32
    %226 = vector.broadcast %cst_101 : f32 to vector<16x1xf32>
    %227 = arith.addf %223, %226 : vector<16x1xf32>
    %228 = math.rsqrt %227 : vector<16x1xf32>
    %229 = vector.broadcast %228 : vector<16x1xf32> to vector<16x32xf32>
    %230 = arith.mulf %225, %229 : vector<16x32xf32>
    %231 = vector.broadcast %210 : vector<1x32xf32> to vector<16x32xf32>
    %232 = arith.mulf %230, %231 : vector<16x32xf32>
    %233 = vector.broadcast %212 : vector<1x32xf32> to vector<16x32xf32>
    %234 = arith.addf %232, %233 : vector<16x32xf32>
    %c1_102 = arith.constant 1 : index
    %c0_103 = arith.constant 0 : index
    %c0_104 = arith.constant 0 : index
    %235 = vector.load %arg4[%c1_102, %c0_103, %c0_104] : memref<2x103x64xf32, #tpu.memory_space<vmem>>, vector<1x32x64xf32>
    %236 = vector.shape_cast %235 : vector<1x32x64xf32> to vector<32x64xf32>
    %cst_105 = arith.constant dense<0.000000e+00> : vector<16x64xf32>
    %237 = tpu.matmul %234, %236, %cst_105 {dimension_numbers = #tpu.dot_dimension_numbers<[1], [0], [0], [1], [0, 0, 1, 1], [], []>} : vector<16x32xf32>, vector<32x64xf32>, vector<16x64xf32> -> vector<16x64xf32>
    %c1_106 = arith.constant 1 : index
    %c96_107 = arith.constant 96 : index
    %c0_108 = arith.constant 0 : index
    %238 = vector.load %arg4[%c1_106, %c96_107, %c0_108] : memref<2x103x64xf32, #tpu.memory_space<vmem>>, vector<1x1x64xf32>
    %239 = vector.shape_cast %238 : vector<1x1x64xf32> to vector<1x64xf32>
    %240 = vector.broadcast %239 : vector<1x64xf32> to vector<16x64xf32>
    %241 = arith.addf %237, %240 : vector<16x64xf32>
    %cst_109 = arith.constant 5.000000e-01 : f32
    %242 = vector.broadcast %cst_109 : f32 to vector<16x64xf32>
    %243 = arith.mulf %242, %241 : vector<16x64xf32>
    %cst_110 = arith.constant 4.471500e-02 : f32
    %244 = vector.broadcast %cst_110 : f32 to vector<16x64xf32>
    %245 = arith.mulf %244, %241 : vector<16x64xf32>
    %246 = arith.mulf %245, %241 : vector<16x64xf32>
    %247 = arith.mulf %246, %241 : vector<16x64xf32>
    %248 = arith.addf %241, %247 : vector<16x64xf32>
    %cst_111 = arith.constant 0.797884583 : f32
    %249 = vector.broadcast %cst_111 : f32 to vector<16x64xf32>
    %250 = arith.mulf %249, %248 : vector<16x64xf32>
    %251 = math.tanh %250 : vector<16x64xf32>
    %cst_112 = arith.constant 1.000000e+00 : f32
    %252 = vector.broadcast %cst_112 : f32 to vector<16x64xf32>
    %253 = arith.addf %252, %251 : vector<16x64xf32>
    %254 = arith.mulf %243, %253 : vector<16x64xf32>
    %c1_113 = arith.constant 1 : index
    %c32_114 = arith.constant 32 : index
    %c0_115 = arith.constant 0 : index
    %255 = vector.load %arg4[%c1_113, %c32_114, %c0_115] : memref<2x103x64xf32, #tpu.memory_space<vmem>>, vector<1x64x32xf32>
    %256 = vector.shape_cast %255 : vector<1x64x32xf32> to vector<64x32xf32>
    %cst_116 = arith.constant dense<0.000000e+00> : vector<16x32xf32>
    %257 = tpu.matmul %254, %256, %cst_116 {dimension_numbers = #tpu.dot_dimension_numbers<[1], [0], [0], [1], [0, 0, 1, 1], [], []>} : vector<16x64xf32>, vector<64x32xf32>, vector<16x32xf32> -> vector<16x32xf32>
    %c1_117 = arith.constant 1 : index
    %c98_118 = arith.constant 98 : index
    %c0_119 = arith.constant 0 : index
    %258 = vector.load %arg4[%c1_117, %c98_118, %c0_119] : memref<2x103x64xf32, #tpu.memory_space<vmem>>, vector<1x1x32xf32>
    %259 = vector.shape_cast %258 : vector<1x1x32xf32> to vector<1x32xf32>
    %260 = vector.broadcast %259 : vector<1x32xf32> to vector<16x32xf32>
    %261 = arith.addf %257, %260 : vector<16x32xf32>
    %262 = arith.addf %261, %234 : vector<16x32xf32>
    %c1_120 = arith.constant 1 : index
    %c101_121 = arith.constant 101 : index
    %c0_122 = arith.constant 0 : index
    %263 = vector.load %arg4[%c1_120, %c101_121, %c0_122] : memref<2x103x64xf32, #tpu.memory_space<vmem>>, vector<1x1x32xf32>
    %264 = vector.shape_cast %263 : vector<1x1x32xf32> to vector<1x32xf32>
    %c1_123 = arith.constant 1 : index
    %c102_124 = arith.constant 102 : index
    %c0_125 = arith.constant 0 : index
    %265 = vector.load %arg4[%c1_123, %c102_124, %c0_125] : memref<2x103x64xf32, #tpu.memory_space<vmem>>, vector<1x1x32xf32>
    %266 = vector.shape_cast %265 : vector<1x1x32xf32> to vector<1x32xf32>
    %cst_126 = arith.constant dense<0.000000e+00> : vector<16xf32>
    %267 = vector.multi_reduction <add>, %262, %cst_126 [1] : vector<16x32xf32> to vector<16xf32>
    %268 = vector.shape_cast %267 : vector<16xf32> to vector<16x1xf32>
    %cst_127 = arith.constant 3.200000e+01 : f32
    %269 = vector.broadcast %cst_127 : f32 to vector<16x1xf32>
    %270 = arith.divf %268, %269 : vector<16x1xf32>
    %271 = vector.broadcast %270 : vector<16x1xf32> to vector<16x32xf32>
    %272 = arith.subf %262, %271 : vector<16x32xf32>
    %273 = arith.mulf %272, %272 : vector<16x32xf32>
    %cst_128 = arith.constant dense<0.000000e+00> : vector<16xf32>
    %274 = vector.multi_reduction <add>, %273, %cst_128 [1] : vector<16x32xf32> to vector<16xf32>
    %275 = vector.shape_cast %274 : vector<16xf32> to vector<16x1xf32>
    %cst_129 = arith.constant 3.200000e+01 : f32
    %276 = vector.broadcast %cst_129 : f32 to vector<16x1xf32>
    %277 = arith.divf %275, %276 : vector<16x1xf32>
    %278 = vector.broadcast %270 : vector<16x1xf32> to vector<16x32xf32>
    %279 = arith.subf %262, %278 : vector<16x32xf32>
    %cst_130 = arith.constant 9.99999996E-13 : f32
    %280 = vector.broadcast %cst_130 : f32 to vector<16x1xf32>
    %281 = arith.addf %277, %280 : vector<16x1xf32>
    %282 = math.rsqrt %281 : vector<16x1xf32>
    %283 = vector.broadcast %282 : vector<16x1xf32> to vector<16x32xf32>
    %284 = arith.mulf %279, %283 : vector<16x32xf32>
    %285 = vector.broadcast %264 : vector<1x32xf32> to vector<16x32xf32>
    %286 = arith.mulf %284, %285 : vector<16x32xf32>
    %287 = vector.broadcast %266 : vector<1x32xf32> to vector<16x32xf32>
    %288 = arith.addf %286, %287 : vector<16x32xf32>
    %cst_131 = arith.constant dense<0.000000e+00> : vector<2x32xf32>
    %289 = tpu.matmul %26, %288, %cst_131 {dimension_numbers = #tpu.dot_dimension_numbers<[1], [0], [0], [1], [0, 0, 1, 1], [], []>} : vector<2x16xf32>, vector<16x32xf32>, vector<2x32xf32> -> vector<2x32xf32>
    %c32_132 = arith.constant 32 : index
    %c0_133 = arith.constant 0 : index
    %290 = vector.load %arg5[%c32_132, %c0_133] : memref<70x256xf32, #tpu.memory_space<vmem>>, vector<32x32xf32>
    %cst_134 = arith.constant dense<0.000000e+00> : vector<2x32xf32>
    %291 = tpu.matmul %289, %290, %cst_134 {dimension_numbers = #tpu.dot_dimension_numbers<[1], [0], [0], [1], [0, 0, 1, 1], [], []>} : vector<2x32xf32>, vector<32x32xf32>, vector<2x32xf32> -> vector<2x32xf32>
    %c64 = arith.constant 64 : index
    %c0_135 = arith.constant 0 : index
    %292 = vector.load %arg5[%c64, %c0_135] : memref<70x256xf32, #tpu.memory_space<vmem>>, vector<1x32xf32>
    %293 = vector.broadcast %292 : vector<1x32xf32> to vector<2x32xf32>
    %294 = arith.addf %291, %293 : vector<2x32xf32>
    %cst_136 = arith.constant 5.000000e-01 : f32
    %295 = vector.broadcast %cst_136 : f32 to vector<2x32xf32>
    %296 = arith.mulf %295, %294 : vector<2x32xf32>
    %cst_137 = arith.constant 4.471500e-02 : f32
    %297 = vector.broadcast %cst_137 : f32 to vector<2x32xf32>
    %298 = arith.mulf %297, %294 : vector<2x32xf32>
    %299 = arith.mulf %298, %294 : vector<2x32xf32>
    %300 = arith.mulf %299, %294 : vector<2x32xf32>
    %301 = arith.addf %294, %300 : vector<2x32xf32>
    %cst_138 = arith.constant 0.797884583 : f32
    %302 = vector.broadcast %cst_138 : f32 to vector<2x32xf32>
    %303 = arith.mulf %302, %301 : vector<2x32xf32>
    %304 = math.tanh %303 : vector<2x32xf32>
    %cst_139 = arith.constant 1.000000e+00 : f32
    %305 = vector.broadcast %cst_139 : f32 to vector<2x32xf32>
    %306 = arith.addf %305, %304 : vector<2x32xf32>
    %307 = arith.mulf %296, %306 : vector<2x32xf32>
    %c66 = arith.constant 66 : index
    %c0_140 = arith.constant 0 : index
    %308 = vector.load %arg5[%c66, %c0_140] : memref<70x256xf32, #tpu.memory_space<vmem>>, vector<1x32xf32>
    %c67 = arith.constant 67 : index
    %c0_141 = arith.constant 0 : index
    %309 = vector.load %arg5[%c67, %c0_141] : memref<70x256xf32, #tpu.memory_space<vmem>>, vector<1x32xf32>
    %cst_142 = arith.constant dense<0.000000e+00> : vector<2xf32>
    %310 = vector.multi_reduction <add>, %307, %cst_142 [1] : vector<2x32xf32> to vector<2xf32>
    %311 = vector.shape_cast %310 : vector<2xf32> to vector<2x1xf32>
    %cst_143 = arith.constant 3.200000e+01 : f32
    %312 = vector.broadcast %cst_143 : f32 to vector<2x1xf32>
    %313 = arith.divf %311, %312 : vector<2x1xf32>
    %314 = vector.broadcast %313 : vector<2x1xf32> to vector<2x32xf32>
    %315 = arith.subf %307, %314 : vector<2x32xf32>
    %316 = arith.mulf %315, %315 : vector<2x32xf32>
    %cst_144 = arith.constant dense<0.000000e+00> : vector<2xf32>
    %317 = vector.multi_reduction <add>, %316, %cst_144 [1] : vector<2x32xf32> to vector<2xf32>
    %318 = vector.shape_cast %317 : vector<2xf32> to vector<2x1xf32>
    %cst_145 = arith.constant 3.200000e+01 : f32
    %319 = vector.broadcast %cst_145 : f32 to vector<2x1xf32>
    %320 = arith.divf %318, %319 : vector<2x1xf32>
    %321 = vector.broadcast %313 : vector<2x1xf32> to vector<2x32xf32>
    %322 = arith.subf %307, %321 : vector<2x32xf32>
    %cst_146 = arith.constant 9.99999996E-13 : f32
    %323 = vector.broadcast %cst_146 : f32 to vector<2x1xf32>
    %324 = arith.addf %320, %323 : vector<2x1xf32>
    %325 = math.rsqrt %324 : vector<2x1xf32>
    %326 = vector.broadcast %325 : vector<2x1xf32> to vector<2x32xf32>
    %327 = arith.mulf %322, %326 : vector<2x32xf32>
    %328 = vector.broadcast %308 : vector<1x32xf32> to vector<2x32xf32>
    %329 = arith.mulf %327, %328 : vector<2x32xf32>
    %330 = vector.broadcast %309 : vector<1x32xf32> to vector<2x32xf32>
    %331 = arith.addf %329, %330 : vector<2x32xf32>
    %c0_147 = arith.constant 0 : index
    %c0_148 = arith.constant 0 : index
    %332 = vector.load %arg5[%c0_147, %c0_148] : memref<70x256xf32, #tpu.memory_space<vmem>>, vector<32x256xf32>
    %cst_149 = arith.constant dense<0.000000e+00> : vector<2x256xf32>
    %333 = tpu.matmul %331, %332, %cst_149 {dimension_numbers = #tpu.dot_dimension_numbers<[1], [0], [0], [1], [0, 0, 1, 1], [], []>} : vector<2x32xf32>, vector<32x256xf32>, vector<2x256xf32> -> vector<2x256xf32>
    %c65 = arith.constant 65 : index
    %c0_150 = arith.constant 0 : index
    %334 = vector.load %arg5[%c65, %c0_150] : memref<70x256xf32, #tpu.memory_space<vmem>>, vector<1x256xf32>
    %335 = vector.broadcast %334 : vector<1x256xf32> to vector<2x256xf32>
    %336 = arith.addf %333, %335 : vector<2x256xf32>
    %337 = tpu.iota {dimensions = array<i32: 1>} : vector<2x256xi32>
    %cst_151 = arith.constant dense<0xFF800000> : vector<2xf32>
    %338 = vector.multi_reduction <maximumf>, %336, %cst_151 [1] : vector<2x256xf32> to vector<2xf32>
    %339 = vector.shape_cast %338 : vector<2xf32> to vector<2x1xf32>
    %340 = vector.broadcast %339 : vector<2x1xf32> to vector<2x256xf32>
    %341 = arith.cmpf oeq, %336, %340 : vector<2x256xf32>
    %c256_i32 = arith.constant 256 : i32
    %342 = vector.broadcast %c256_i32 : i32 to vector<2x256xi32>
    %343 = arith.select %341, %337, %342 : vector<2x256xi1>, vector<2x256xi32>
    %cst_152 = arith.constant dense<2147483647> : vector<2xi32>
    %344 = vector.multi_reduction <minsi>, %343, %cst_152 [1] : vector<2x256xi32> to vector<2xi32>
    %345 = vector.shape_cast %344 : vector<2xi32> to vector<2x1xi32>
    %346 = vector.broadcast %345 : vector<2x1xi32> to vector<2x256xi32>
    %347 = arith.cmpi eq, %337, %346 : vector<2x256xi32>
    %cst_153 = arith.constant 0xFF800000 : f32
    %348 = vector.broadcast %cst_153 : f32 to vector<2x256xf32>
    %349 = arith.select %347, %348, %336 : vector<2x256xi1>, vector<2x256xf32>
    %cst_154 = arith.constant dense<0xFF800000> : vector<2xf32>
    %350 = vector.multi_reduction <maximumf>, %349, %cst_154 [1] : vector<2x256xf32> to vector<2xf32>
    %351 = vector.shape_cast %350 : vector<2xf32> to vector<2x1xf32>
    %352 = vector.broadcast %351 : vector<2x1xf32> to vector<2x256xf32>
    %353 = arith.cmpf oeq, %349, %352 : vector<2x256xf32>
    %c256_i32_155 = arith.constant 256 : i32
    %354 = vector.broadcast %c256_i32_155 : i32 to vector<2x256xi32>
    %355 = arith.select %353, %337, %354 : vector<2x256xi1>, vector<2x256xi32>
    %cst_156 = arith.constant dense<2147483647> : vector<2xi32>
    %356 = vector.multi_reduction <minsi>, %355, %cst_156 [1] : vector<2x256xi32> to vector<2xi32>
    %357 = vector.shape_cast %356 : vector<2xi32> to vector<2x1xi32>
    %358 = vector.broadcast %357 : vector<2x1xi32> to vector<2x256xi32>
    %359 = arith.cmpi eq, %337, %358 : vector<2x256xi32>
    %cst_157 = arith.constant 0xFF800000 : f32
    %360 = vector.broadcast %cst_157 : f32 to vector<2x256xf32>
    %361 = arith.select %359, %360, %349 : vector<2x256xi1>, vector<2x256xf32>
    %cst_158 = arith.constant dense<0xFF800000> : vector<2xf32>
    %362 = vector.multi_reduction <maximumf>, %361, %cst_158 [1] : vector<2x256xf32> to vector<2xf32>
    %363 = vector.shape_cast %362 : vector<2xf32> to vector<2x1xf32>
    %364 = vector.broadcast %363 : vector<2x1xf32> to vector<2x256xf32>
    %365 = arith.cmpf oeq, %361, %364 : vector<2x256xf32>
    %c256_i32_159 = arith.constant 256 : i32
    %366 = vector.broadcast %c256_i32_159 : i32 to vector<2x256xi32>
    %367 = arith.select %365, %337, %366 : vector<2x256xi1>, vector<2x256xi32>
    %cst_160 = arith.constant dense<2147483647> : vector<2xi32>
    %368 = vector.multi_reduction <minsi>, %367, %cst_160 [1] : vector<2x256xi32> to vector<2xi32>
    %369 = vector.shape_cast %368 : vector<2xi32> to vector<2x1xi32>
    %370 = vector.broadcast %369 : vector<2x1xi32> to vector<2x256xi32>
    %371 = arith.cmpi eq, %337, %370 : vector<2x256xi32>
    %cst_161 = arith.constant 0xFF800000 : f32
    %372 = vector.broadcast %cst_161 : f32 to vector<2x256xf32>
    %373 = arith.select %371, %372, %361 : vector<2x256xi1>, vector<2x256xf32>
    %cst_162 = arith.constant dense<0xFF800000> : vector<2xf32>
    %374 = vector.multi_reduction <maximumf>, %373, %cst_162 [1] : vector<2x256xf32> to vector<2xf32>
    %375 = vector.shape_cast %374 : vector<2xf32> to vector<2x1xf32>
    %376 = vector.broadcast %375 : vector<2x1xf32> to vector<2x256xf32>
    %377 = arith.cmpf oeq, %373, %376 : vector<2x256xf32>
    %c256_i32_163 = arith.constant 256 : i32
    %378 = vector.broadcast %c256_i32_163 : i32 to vector<2x256xi32>
    %379 = arith.select %377, %337, %378 : vector<2x256xi1>, vector<2x256xi32>
    %cst_164 = arith.constant dense<2147483647> : vector<2xi32>
    %380 = vector.multi_reduction <minsi>, %379, %cst_164 [1] : vector<2x256xi32> to vector<2xi32>
    %381 = vector.shape_cast %380 : vector<2xi32> to vector<2x1xi32>
    %382 = vector.broadcast %381 : vector<2x1xi32> to vector<2x256xi32>
    %383 = arith.cmpi eq, %337, %382 : vector<2x256xi32>
    %cst_165 = arith.constant 0xFF800000 : f32
    %384 = vector.broadcast %cst_165 : f32 to vector<2x256xf32>
    %385 = arith.select %383, %384, %373 : vector<2x256xi1>, vector<2x256xf32>
    %cst_166 = arith.constant dense<0xFF800000> : vector<2xf32>
    %386 = vector.multi_reduction <maximumf>, %385, %cst_166 [1] : vector<2x256xf32> to vector<2xf32>
    %387 = vector.shape_cast %386 : vector<2xf32> to vector<2x1xf32>
    %388 = vector.broadcast %387 : vector<2x1xf32> to vector<2x256xf32>
    %389 = arith.cmpf oeq, %385, %388 : vector<2x256xf32>
    %c256_i32_167 = arith.constant 256 : i32
    %390 = vector.broadcast %c256_i32_167 : i32 to vector<2x256xi32>
    %391 = arith.select %389, %337, %390 : vector<2x256xi1>, vector<2x256xi32>
    %cst_168 = arith.constant dense<2147483647> : vector<2xi32>
    %392 = vector.multi_reduction <minsi>, %391, %cst_168 [1] : vector<2x256xi32> to vector<2xi32>
    %393 = vector.shape_cast %392 : vector<2xi32> to vector<2x1xi32>
    %394 = tpu.concatenate %345, %357, %369, %381, %393 in 1 : vector<2x1xi32>, vector<2x1xi32>, vector<2x1xi32>, vector<2x1xi32>, vector<2x1xi32> -> vector<2x5xi32>
    %c0_169 = arith.constant 0 : index
    %c0_170 = arith.constant 0 : index
    %395 = vector.load %arg6[%c0_169, %c0_170] : memref<2x5xi32, #tpu.memory_space<vmem>>, vector<2x5xi32>
    tpu.vector_store %arg6[%c0_169, %c0_170], %394 {strides = array<i32>} : memref<2x5xi32, #tpu.memory_space<vmem>>, vector<2x5xi32>,
    return
  }
}

</mosaic_0001>

<bundles_post_ra>
// kernel: bert_mlm_forward.1
= control target key start
LH: loop header
LB: loop body
LE: loop exit
PB: predicated region body
PF: predicated region fallthrough
CT: control target
= control target key end

     0   :  { %vm28_vm0 = vcmask 261120   ;;  %s4514_s0 = inlined_call_operand.vmem [shape: f32[16,32], index: 0, kind: input, shape index: {}]   ;;  %s4515_s1 = inlined_call_operand.vmem [shape: f32[18,16], index: 1, kind: input, shape index: {}]   ;;  %s4516_s2 = inlined_call_operand.vmem [shape: f32[2,33,768], index: 2, kind: input, shape index: {}]   ;;  %s4517_s3 = inlined_call_operand.vmem [shape: f32[4,128,32], index: 3, kind: input, shape index: {}]   ;;  %s4518_s4 = inlined_call_operand.vmem [shape: f32[2,103,64], index: 4, kind: input, shape index: {}]   ;;  %s4519_s5 = inlined_call_operand.vmem [shape: f32[70,256], index: 5, kind: input, shape index: {}]   ;;  %s4520_s6 = inlined_call_operand.hbm [shape: s32[2,5], index: 6, kind: output, shape index: {}]  }
   0x1   :  { %v24_v0 = vld [vmem:[%s4514_s0] sm:$0xff]  ;;  %v25_v1 = vld [vmem:[%s4514_s0 + $0x8] sm:$0xff] }
   0x2   :  { %11 = vsyncpa [#allocation3], 0  ;;  %v29_v2 = vsel %vm28_vm0, %v24_v0, 0.0  ;;  %v32_v3 = vsel %vm28_vm0, %v25_v1, 0.0  ;;  %v64_v14 = vld [vmem:[%s4516_s2 + $0x8] sm:$0xff]  ;;  %v70_v15 = vld [vmem:[%s4516_s2 + $0x38] sm:$0xff] }
   0x3   :  { %30 = vadd.xlane.f32.xlu0 %v29_v2  ;;  %v68_v16 = vld [vmem:[%s4516_s2 + $0x28] sm:$0xff]  ;;  %v3336_v17 = vpack.c.bf16 %v70_v15, %v64_v14  ;;  %v74_v18 = vld [vmem:[%s4516_s2 + $0x58] sm:$0xff]  ;;  %v63_v19 = vld [vmem:[%s4516_s2] sm:$0xff]  ;;  %v3705_v21 = vmov 0.0   ;;  %vm434_vm1 = vcmask 130048   ;;  %vm1069_vm2 = vcmask 523264  }
   0x4   :  { %v69_v20 = vld [vmem:[%s4516_s2 + $0x30] sm:$0xff]  ;;  %192 = vmatprep.mubr.f32.mxu1 %v3705_v21  ;;  %346 = vmatprep.mubr.f32.mxu0 %v3705_v21  ;;  %v3352_v22 = vpack.c.bf16 %v74_v18, %v68_v16  ;;  %v67_v24 = vld [vmem:[%s4516_s2 + $0x20] sm:$0xff]  ;;  %v76_v26 = vld [vmem:[%s4516_s2 + $0x68] sm:$0xff]  ;;  %vm3707_vm3 = vmmov 0   ;;  %vm2486_vm4 = vcmask 254976   ;;  %vm2600_vm5 = vcmask 1041408  }
   0x5   :  { %v3338_v23 = vpack.c.bf16 %v69_v20, %v63_v19  ;;  %v73_v25 = vld [vmem:[%s4516_s2 + $0x50] sm:$0xff]  ;;  %3337 = vmatprep.subr.bf16.mxu1 %v3336_v17  ;;  %v82_v28 = vld [vmem:[%s4516_s2 + $0x98] sm:$0xff]  ;;  %v80_v29 = vld [vmem:[%s4516_s2 + $0x88] sm:$0xff] }
   0x6   :  { %v3354_v27 = vpack.c.bf16 %v73_v25, %v67_v24  ;;  %v86_v30 = vld [vmem:[%s4516_s2 + $0xb8] sm:$0xff]  ;;  %3353 = vmatprep.subr.bf16.mxu0 %v3352_v22  ;;  %v3340_v31 = vpack.c.bf16 %v82_v28, %v76_v26  ;;  %v75_v33 = vld [vmem:[%s4516_s2 + $0x60] sm:$0xff]  ;;  %v81_v34 = vld [vmem:[%s4516_s2 + $0x90] sm:$0xff] }
   0x7   :  { %33 = vadd.xlane.f32.xlu0 %v32_v3  ;;  %3339 = vmatpush1.bf16.msra.mxu1 %v3338_v23  ;;  %v3356_v32 = vpack.c.bf16 %v86_v30, %v80_v29  ;;  %v79_v35 = vld [vmem:[%s4516_s2 + $0x80] sm:$0xff]  ;;  %v3342_v36 = vpack.c.bf16 %v81_v34, %v75_v33  ;;  %v85_v37 = vld [vmem:[%s4516_s2 + $0xb0] sm:$0xff]  ;;  %v66_v39 = vld [vmem:[%s4516_s2 + $0x18] sm:$0xff]  ;;  %v92_v3 = vlaneseq }
   0x8   :  { %3355 = vmatpush1.bf16.msra.mxu0 %v3354_v27  ;;  %3341 = vmatprep.subr.bf16.mxu1 %v3340_v31  ;;  %v3358_v38 = vpack.c.bf16 %v85_v37, %v79_v35  ;;  %v72_v40 = vld [vmem:[%s4516_s2 + $0x48] sm:$0xff]  ;;  %v26_v49 = vld [vmem:[%s4519_s5 + $0x84] ss:$0 sm:$0xff]  ;;  %v65_v51 = vld [vmem:[%s4516_s2 + $0x10] sm:$0xff] }
   0x9   :  { %3357 = vmatprep.subr.bf16.mxu0 %v3356_v32  ;;  %v3344_v41 = vpack.c.bf16 %v72_v40, %v66_v39  ;;  %v71_v52 = vld [vmem:[%s4516_s2 + $0x40] sm:$0xff]  ;;  %v78_v54 = vld [vmem:[%s4516_s2 + $0x78] sm:$0xff]  ;;  %v84_v55 = vld [vmem:[%s4516_s2 + $0xa8] sm:$0xff] }
   0xa   :  { %v27_v53 = vld [vmem:[%s4519_s5 + $0x85] ss:$0 sm:$0xff]  ;;  %v3346_v58 = vpack.c.bf16 %v71_v52, %v65_v51  ;;  %v3348_v61 = vpack.c.bf16 %v84_v55, %v78_v54  ;;  %v77_v62 = vld [vmem:[%s4516_s2 + $0x70] sm:$0xff] }
   0xb   :  { %3343 = vmatpush1.bf16.msra.mxu1 %v3342_v36  ;;  %v83_v63 = vld [vmem:[%s4516_s2 + $0xa0] sm:$0xff] }
   0xc   :  { %3359 = vmatpush1.bf16.msra.mxu0 %v3358_v38  ;;  %3345 = vmatprep.subr.bf16.mxu1 %v3344_v41  ;;  %v3899_v51 = vld [vmem:[%s4515_s1] sm:$0xff] }
  0x90   :  { %v31_v4 = vpop.xlane.xlu0 %30 }
  0x91   :  { %v36_v5 = vmul.f32 0.03125, %v31_v4  ;;  %v3860_v4 = vshrl.u32 %v92_v3, 7 }
  0x93   :  { %v38_v6 = vsub.f32 %v24_v0, %v36_v5  ;;  %v2777_v5 = vld [vmem:[%s4516_s2 + $0xc0] ss:$8 sm:$0xf]  ;;  %v106_v19 = vsub.s32 3, %v3860_v4  ;;  %v102_v29 = vsub.s32 2, %v3860_v4 }
  0x94   :  { %v34_v7 = vpop.xlane.xlu0 %33 }
  0x95   :  { %v37_v8 = vmul.f32 0.03125, %v34_v7  ;;  %v40_v9 = vmul.f32 %v38_v6, %v38_v6 }
  0x97   :  { %v3752_v10 = vsub.f32 %v25_v1, %v37_v8  ;;  %v42_v11 = vsel %vm28_vm0, %v40_v9, 0.0  ;;  %v3350_v1 = vpack.c.bf16 %v83_v63, %v77_v62  ;;  %v3869_v8 = vsub.s32 0, %v3860_v4 }
  0x98   :  { %43 = vadd.xlane.f32.xlu1 %v42_v11  ;;  %v3874_v11 = vsub.s32 1, %v3860_v4 }
  0x99   :  { %v41_v12 = vmul.f32 %v3752_v10, %v3752_v10 }
  0x9b   :  { %v45_v13 = vsel %vm28_vm0, %v41_v12, 0.0  ;;  %v114_v12 = vsub.s32 5, %v3860_v4 }
  0x9c   :  { %46 = vadd.xlane.f32.xlu1 %v45_v13 }
 0x125   :  { %v44_v42 = vpop.xlane.xlu1 %43 }
 0x126   :  { %v48_v43 = vmul.f32 0.03125, %v44_v42 }
 0x128   :  { %v50_v44 = vadd.f32 1e-12, %v48_v43 }
 0x129   :  { %v47_v45 = vpop.xlane.xlu1 %46 }
 0x12a   :  { %3617 = vrsqrt.f32 %v50_v44  ;;  %v49_v46 = vmul.f32 0.03125, %v47_v45 }
 0x12c   :  { %v51_v47 = vadd.f32 1e-12, %v49_v46 }
 0x12e   :  { %3619 = vrsqrt.f32 %v51_v47 }
 0x134   :  { %v3618_v48 = vpop.eup %3617 }
 0x135   :  { %v54_v50 = vmul.f32 %v3618_v48, %v38_v6  ;;  %v2778_v6 = vld [vmem:[%s4516_s2 + $0xc0] ss:$8 sm:$0x30] }
 0x136   :  { %v90_v7 = vor.u32 %v2778_v6, %v2777_v5 }
 0x137   :  { %v56_v56 = vmul.f32 %v54_v50, %v26_v49 }
 0x138   :  { %v3620_v57 = vpop.eup %3619  ;;  %v95_v9 = vrot.slane %v90_v7, %v3869_v8  ;;  %v99_v20 = vrot.slane %v90_v7, %v3874_v11  ;;  %v115_v22 = vrot.slane %v90_v7, %v114_v12  ;;  %v107_v30 = vrot.slane %v90_v7, %v106_v19 }
 0x139   :  { %v3832_v59 = vadd.f32 %v56_v56, %v27_v53  ;;  %v55_v60 = vmul.f32 %v3620_v57, %v3752_v10  ;;  %v110_v10 = vsub.s32 4, %v3860_v4  ;;  %v103_v39 = vrot.slane %v90_v7, %v102_v29 }
 0x13b   :  { %2779 = vmatmul.mubr.msk.f32.vlgmr.msra.gmra.mrb[0].mxu1 %vm28_vm0, %v3832_v59  ;;  %2783 = vmatmul.mubr.msk.f32.vlgmr.msra.gmra.mrb[0].mxu0 %vm28_vm0, %v3832_v59  ;;  %v57_v0 = vmul.f32 %v55_v60, %v26_v49  ;;  %v111_v16 = vrot.slane %v90_v7, %v110_v10  ;;  %v3894_v49 = vld [vmem:[%s4515_s1 + $0x8] sm:$0xff] }
 0x13c   :  { %3347 = vmatpush1.bf16.msra.mxu1 %v3346_v58  ;;  %198 = vmatprep.mubr.f32.mxu1 %v3705_v21 }
 0x13d   :  { %352 = vmatprep.mubr.f32.mxu0 %v3705_v21  ;;  %v3847_v2 = vadd.f32 %v57_v0, %v27_v53  ;;  %3349 = vmatprep.subr.bf16.mxu1 %v3348_v61 }
 0x13f   :  { %2780 = vmatmul.mubr.msk.f32.gmra.mrb[2].mxu1 %vm28_vm0, %v3847_v2  ;;  %2784 = vmatmul.mubr.msk.f32.gmra.mrb[2].mxu0 %vm28_vm0, %v3847_v2 }
 0x140   :  { %3351 = vmatpush1.bf16.msra.mxu1 %v3350_v1  ;;  %269 = vmatprep.mubr.f32.mxu1 %v3705_v21 }
 0x143   :  { %2781 = vmatmul.mubr.msk.f32.vlgmr.msra.gmra.mrb[4].mxu1 %vm28_vm0, %v3832_v59 }
 0x144   :  { %275 = vmatprep.mubr.f32.mxu1 %v3705_v21 }
 0x147   :  { %2782 = vmatmul.mubr.msk.f32.gmra.mrb[6].mxu1 %vm28_vm0, %v3847_v2 }
 0x20e   :  { %v194_v13 = vpop.f32.mrb[0].mxu1  ;;  %v348_v14 = vpop.f32.mrb[0].mxu0 }
 0x20f   :  { %v195_v15 = vadd.f32 %v194_v13, %v95_v9  ;;  %v196_v17 = vpop.f32.mrb[1].mxu1  ;;  %v350_v18 = vpop.f32.mrb[1].mxu0  ;;  %v349_v25 = vadd.f32 %v348_v14, %v111_v16 }
 0x210   :  { %v197_v31 = vadd.f32 %v196_v17, %v99_v20  ;;  %v351_v32 = vadd.f32 %v350_v18, %v115_v22 }
 0x211   :  { %3066 = vmatprep.mubr.f32.mxu1 %v195_v15 }
 0x212   :  { %v200_v23 = vpop.f32.mrb[2].mxu1  ;;  %v354_v24 = vpop.f32.mrb[2].mxu0 }
 0x213   :  { %v355_v26 = vadd.f32 %v354_v24, %v111_v16  ;;  %v202_v27 = vpop.f32.mrb[3].mxu1  ;;  %v356_v28 = vpop.f32.mrb[3].mxu0  ;;  %v201_v48 = vadd.f32 %v200_v23, %v95_v9 }
 0x214   :  { %v203_v33 = vadd.f32 %v202_v27, %v99_v20  ;;  %v357_v34 = vadd.f32 %v356_v28, %v115_v22 }
 0x215   :  { %v3368_v35 = vpack.c.bf16 %v355_v26, %v349_v25 }
 0x216   :  { %v3360_v36 = vpack.c.bf16 %v203_v33, %v197_v31  ;;  %v3886_v37 = vpack.c.bf16 %v357_v34, %v351_v32  ;;  %v271_v38 = vpop.f32.mrb[4].mxu1  ;;  %v2790_v31 = vld [vmem:[%s4517_s3 + $0x88] sm:$0xff]  ;;  %v2791_v32 = vld [vmem:[%s4517_s3 + $0x90] sm:$0xff]  ;;  %v2792_v34 = vld [vmem:[%s4517_s3 + $0x98] sm:$0xff] }
 0x217   :  { %v273_v40 = vpop.f32.mrb[5].mxu1  ;;  %3369 = vmatprep.subr.bf16.mxu0 %v3368_v35  ;;  %v272_v43 = vadd.f32 %v271_v38, %v103_v39  ;;  %v2794_v38 = vld [vmem:[%s4517_s3 + $0xa8] sm:$0xff] }
 0x218   :  { %v274_v41 = vadd.f32 %v273_v40, %v107_v30  ;;  %3361 = vmatprep.subr.bf16.mxu1 %v3360_v36  ;;  %3371 = vmatpush3.bf16.xpose.msra.mxu0 %v3368_v35  ;;  %v3380_v35 = vpack.c.bf16 %v2792_v34, %v2791_v32  ;;  %v2795_v40 = vld [vmem:[%s4517_s3 + $0xb0] sm:$0xff]  ;;  %v547_v32 = vld [vmem:[%s4517_s3 + $0x48] sm:$0xff] }
 0x219   :  { %3363 = vmatpush3.bf16.xpose.msra.mxu1 %v3360_v36  ;;  %v2793_v36 = vld [vmem:[%s4517_s3 + $0xa0] sm:$0xff]  ;;  %v548_v34 = vld [vmem:[%s4517_s3 + $0x50] sm:$0xff] }
 0x21a   :  { %v277_v42 = vpop.f32.mrb[6].mxu1  ;;  %3080 = vmatprep.mubr.f32.mxu0 %v274_v41  ;;  %v2796_v41 = vld [vmem:[%s4517_s3 + $0xb8] sm:$0xff] }
 0x21b   :  { %v278_v44 = vadd.f32 %v277_v42, %v103_v39  ;;  %v279_v45 = vpop.f32.mrb[7].mxu1  ;;  %v3384_v39 = vpack.c.bf16 %v2794_v38, %v2793_v36  ;;  %v3388_v42 = vpack.c.bf16 %v2796_v41, %v2795_v40  ;;  %v550_v38 = vld [vmem:[%s4517_s3 + $0x60] sm:$0xff]  ;;  %v552_v41 = vld [vmem:[%s4517_s3 + $0x70] sm:$0xff] }
 0x21c   :  { %v280_v46 = vadd.f32 %v279_v45, %v107_v30  ;;  %v2789_v30 = vld [vmem:[%s4517_s3 + $0x80] sm:$0xff] }
 0x21d   :  { %v3364_v47 = vpack.c.bf16 %v278_v44, %v272_v43  ;;  %v3376_v33 = vpack.c.bf16 %v2790_v31, %v2789_v30  ;;  %v2797_v43 = vld [vmem:[%s4517_s3 + $0xc0] sm:$0xff]  ;;  %v2798_v44 = vld [vmem:[%s4517_s3 + $0xc8] sm:$0xff] }
 0x21e   :  { %v3392_v45 = vpack.c.bf16 %v2798_v44, %v2797_v43  ;;  %v546_v31 = vld [vmem:[%s4517_s3 + $0x40] sm:$0xff] }
 0x21f   :  { %3365 = vmatprep.subr.bf16.mxu1 %v3364_v47  ;;  %3081 = vmatmul.mubr.f32.vlgmr.msra.gmra.mrb[4].mxu0 %v280_v46  ;;  %v2799_v46 = vld [vmem:[%s4517_s3 + $0xd0] sm:$0xff]  ;;  %v2805_v44 = vld [vmem:[%s4518_s4 + $0x61] ss:$0 sm:$0xff] }
 0x220   :  { %3067 = vmatmul.mubr.f32.vlgmr.msra.gmra.mrb[8].mxu1 %v201_v48  ;;  %3377 = vmatprep.subr.bf16.mxu0 %v3376_v33 }
 0x221   :  { %3367 = vmatpush3.bf16.msra.mxu1 %v3364_v47  ;;  %3379 = vmatpush3.bf16.msra.mxu0 %v3376_v33  ;;  %v2800_v47 = vld [vmem:[%s4517_s3 + $0xd8] sm:$0xff]  ;;  %v3424_v33 = vpack.c.bf16 %v547_v32, %v546_v31  ;;  %v1056_v31 = vld [vmem:[%s4518_s4 + $0x20] sm:$0xff]  ;;  %v1057_v32 = vld [vmem:[%s4518_s4 + $0x28] sm:$0xff] }
 0x222   :  { %3373 = vmatprep.subr.bf16.mxu1 %v3886_v37  ;;  %3381 = vmatprep.subr.bf16.mxu0 %v3380_v35  ;;  %v3396_v48 = vpack.c.bf16 %v2800_v47, %v2799_v46 }
 0x225   :  { %3383 = vmatpush3.bf16.msra.mxu0 %v3380_v35  ;;  %v549_v35 = vld [vmem:[%s4517_s3 + $0x58] sm:$0xff] }
 0x226   :  { %3385 = vmatprep.subr.bf16.mxu0 %v3384_v39  ;;  %v3428_v36 = vpack.c.bf16 %v549_v35, %v548_v34  ;;  %v1058_v34 = vld [vmem:[%s4518_s4 + $0x30] sm:$0xff]  ;;  %v1059_v35 = vld [vmem:[%s4518_s4 + $0x38] sm:$0xff] }
 0x229   :  { %3387 = vmatpush3.bf16.msra.mxu0 %v3384_v39  ;;  %v551_v39 = vld [vmem:[%s4517_s3 + $0x68] sm:$0xff] }
 0x22a   :  { %3389 = vmatprep.subr.bf16.mxu0 %v3388_v42  ;;  %v3432_v40 = vpack.c.bf16 %v551_v39, %v550_v38  ;;  %v3452_v38 = vpack.c.bf16 %v1059_v35, %v1058_v34  ;;  %v1061_v39 = vld [vmem:[%s4518_s4 + $0x48] sm:$0xff]  ;;  %v2816_v35 = vld [vmem:[%s4516_s2 + $0xf0] sm:$0xff] }
 0x22d   :  { %3391 = vmatpush3.bf16.msra.mxu0 %v3388_v42  ;;  %v553_v42 = vld [vmem:[%s4517_s3 + $0x78] sm:$0xff] }
 0x22e   :  { %3393 = vmatprep.subr.bf16.mxu0 %v3392_v45  ;;  %v3436_v43 = vpack.c.bf16 %v553_v42, %v552_v41  ;;  %v1062_v41 = vld [vmem:[%s4518_s4 + $0x50] sm:$0xff]  ;;  %v1063_v42 = vld [vmem:[%s4518_s4 + $0x58] sm:$0xff] }
 0x231   :  { %3395 = vmatpush3.bf16.msra.mxu0 %v3392_v45 }
 0x232   :  { %3397 = vmatprep.subr.bf16.mxu0 %v3396_v48 }
 0x235   :  { %3399 = vmatpush3.bf16.msra.mxu0 %v3396_v48 }
 0x2f2   :  { %v3082_v50 = vpop.f32.mrb[4].mxu0 }
 0x2f3   :  { %v3068_v52 = vpop.f32.mrb[8].mxu1  ;;  %v620_v53 = vpop.f32.mrb[5].mxu0  ;;  %v626_v57 = vadd.f32 %v3082_v50, %v3894_v49  ;;  %v2801_v50 = vld [vmem:[%s4517_s3 + $0xe0] sm:$0xff] }
 0x2f4   :  { %v431_v54 = vadd.f32 %v3068_v52, %v3894_v49  ;;  %v425_v55 = vpop.f32.mrb[9].mxu1  ;;  %v621_v60 = vadd.f32 %v620_v53, %v3899_v51  ;;  %v2802_v52 = vld [vmem:[%s4517_s3 + $0xe8] sm:$0xff] }
 0x2f5   :  { %v426_v56 = vadd.f32 %v425_v55, %v3899_v51  ;;  %v632_v62 = vsel %vm434_vm1, %v626_v57, -inf  ;;  %v3400_v53 = vpack.c.bf16 %v2802_v52, %v2801_v50 }
 0x2f6   :  { %v438_v58 = vsel %vm434_vm1, %v431_v54, -inf  ;;  %v629_v63 = vsel %vm434_vm1, %v621_v60, -inf }
 0x2f7   :  { %439 = vmax.xlane.f32.xlu1 %v438_v58  ;;  %v435_v61 = vsel %vm434_vm1, %v426_v56, -inf  ;;  %3401 = vmatprep.subr.bf16.mxu0 %v3400_v53 }
 0x2f8   :  { %436 = vmax.xlane.f32.xlu0 %v435_v61  ;;  %3403 = vmatpush3.bf16.msra.mxu0 %v3400_v53 }
 0x2fb   :  { %633 = vmax.xlane.f32.xlu1 %v632_v62 }
 0x2fc   :  { %630 = vmax.xlane.f32.xlu0 %v629_v63 }
 0x384   :  { %v440_v0 = vpop.xlane.xlu1 %439 }
 0x385   :  { %v442_v1 = vsub.f32 %v431_v54, %v440_v0  ;;  %v437_v5 = vpop.xlane.xlu0 %436 }
 0x386   :  { %v441_v6 = vsub.f32 %v426_v56, %v437_v5 }
 0x387   :  { %v445_v7 = vmul.f32 1.442695, %v442_v1 }
 0x388   :  { %v443_v9 = vmul.f32 1.442695, %v441_v6  ;;  %v634_v13 = vpop.xlane.xlu1 %633  ;;  %v2803_v6 = vld [vmem:[%s4517_s3 + $0xf0] sm:$0xff] }
 0x389   :  { %3621 = vpow2.f32 %v445_v7  ;;  %v636_v14 = vsub.f32 %v626_v57, %v634_v13  ;;  %v631_v15 = vpop.xlane.xlu0 %630  ;;  %v2804_v7 = vld [vmem:[%s4517_s3 + $0xf8] sm:$0xff]  ;;  %v539_v13 = vld [vmem:[%s4517_s3 + $0x8] sm:$0xff] }
 0x38a   :  { %3623 = vpow2.f32 %v443_v9  ;;  %v635_v16 = vsub.f32 %v621_v60, %v631_v15  ;;  %v3404_v9 = vpack.c.bf16 %v2804_v7, %v2803_v6  ;;  %v950_v6 = vld [vmem:[%s4518_s4 + $0x10] sm:$0xff]  ;;  %v951_v7 = vld [vmem:[%s4518_s4 + $0x18] sm:$0xff] }
 0x38b   :  { %v639_v17 = vmul.f32 1.442695, %v636_v14 }
 0x38c   :  { %v637_v18 = vmul.f32 1.442695, %v635_v16  ;;  %3405 = vmatprep.subr.bf16.mxu0 %v3404_v9 }
 0x38d   :  { %3625 = vpow2.f32 %v639_v17  ;;  %3407 = vmatpush3.bf16.msra.mxu0 %v3404_v9  ;;  %v540_v17 = vld [vmem:[%s4517_s3 + $0x10] sm:$0xff]  ;;  %v3444_v9 = vpack.c.bf16 %v951_v7, %v950_v6  ;;  %v2811_v7 = vld [vmem:[%s4518_s4 + $0x62] ss:$0 sm:$0xff] }
 0x38e   :  { %3627 = vpow2.f32 %v637_v18  ;;  %v541_v18 = vld [vmem:[%s4517_s3 + $0x18] sm:$0xff] }
 0x393   :  { %v3622_v20 = vpop.eup %3621 }
 0x394   :  { %v3624_v22 = vpop.eup %3623  ;;  %v450_v23 = vsel %vm434_vm1, %v3622_v20, 0.0 }
 0x395   :  { %451 = vadd.xlane.f32.xlu1 %v450_v23  ;;  %v447_v24 = vsel %vm434_vm1, %v3624_v22, 0.0  ;;  %v3412_v23 = vpack.c.bf16 %v541_v18, %v540_v17 }
 0x396   :  { %448 = vadd.xlane.f32.xlu0 %v447_v24  ;;  %v542_v24 = vld [vmem:[%s4517_s3 + $0x20] sm:$0xff] }
 0x397   :  { %v3626_v25 = vpop.eup %3625 }
 0x398   :  { %v3628_v26 = vpop.eup %3627  ;;  %v644_v27 = vsel %vm434_vm1, %v3626_v25, 0.0 }
 0x399   :  { %645 = vadd.xlane.f32.xlu1 %v644_v27  ;;  %v641_v28 = vsel %vm434_vm1, %v3628_v26, 0.0  ;;  %v544_v27 = vld [vmem:[%s4517_s3 + $0x30] sm:$0xff] }
 0x39a   :  { %642 = vadd.xlane.f32.xlu0 %v641_v28  ;;  %v545_v28 = vld [vmem:[%s4517_s3 + $0x38] sm:$0xff] }
 0x39b   :  { %v3420_v30 = vpack.c.bf16 %v545_v28, %v544_v27 }
 0x422   :  { %v452_v54 = vpop.xlane.xlu1 %451 }
 0x423   :  { %3629 = vrcp.f32 %v452_v54  ;;  %v449_v55 = vpop.xlane.xlu0 %448 }
 0x424   :  { %3631 = vrcp.f32 %v449_v55 }
 0x426   :  { %v646_v56 = vpop.xlane.xlu1 %645 }
 0x427   :  { %3633 = vrcp.f32 %v646_v56  ;;  %v643_v57 = vpop.xlane.xlu0 %642 }
 0x428   :  { %3635 = vrcp.f32 %v643_v57 }
 0x42d   :  { %v3630_v58 = vpop.eup %3629 }
 0x42e   :  { %v3632_v60 = vpop.eup %3631  ;;  %v456_v62 = vmul.f32 %v3630_v58, %v3622_v20 }
 0x42f   :  { %v455_v61 = vmul.f32 %v3632_v60, %v3624_v22 }
 0x431   :  { %v3634_v63 = vpop.eup %3633  ;;  %3073 = vmatprep.mubr.msk.f32.mxu1 %vm434_vm1, %v455_v61 }
 0x432   :  { %v3636_v0 = vpop.eup %3635  ;;  %3074 = vmatmul.mubr.msk.f32.vlgmr.msra.gmra.mrb[10].mxu1 %vm434_vm1, %v456_v62  ;;  %v650_v5 = vmul.f32 %v3634_v63, %v3626_v25  ;;  %v543_v25 = vld [vmem:[%s4517_s3 + $0x28] sm:$0xff] }
 0x433   :  { %3375 = vmatpush3.bf16.msra.mxu1 %v3886_v37  ;;  %v649_v1 = vmul.f32 %v3636_v0, %v3628_v26  ;;  %v538_v37 = vld [vmem:[%s4517_s3] sm:$0xff]  ;;  %v3416_v26 = vpack.c.bf16 %v543_v25, %v542_v24 }
 0x434   :  { %v3408_v14 = vpack.c.bf16 %v539_v13, %v538_v37  ;;  %v2807_v25 = vld [vmem:[%s4518_s4 + $0x64] ss:$0 sm:$0xff] }
 0x435   :  { %3087 = vmatprep.mubr.msk.f32.mxu1 %vm434_vm1, %v649_v1  ;;  %v949_v1 = vld [vmem:[%s4518_s4 + $0x8] sm:$0xff] }
 0x436   :  { %3088 = vmatmul.mubr.msk.f32.vlgmr.msra.gmra.mrb[12].mxu1 %vm434_vm1, %v650_v5  ;;  %3409 = vmatprep.subr.bf16.mxu0 %v3408_v14 }
 0x505   :  { %v3075_v15 = vpop.f32.mrb[10].mxu1 }
 0x506   :  { %v529_v16 = vpop.f32.mrb[11].mxu1 }
 0x509   :  { %v3089_v20 = vpop.f32.mrb[12].mxu1 }
 0x50a   :  { %v723_v22 = vpop.f32.mrb[13].mxu1 }
 0x50b   :  { %3122 = vmatprep.mubr.f32.mxu0 %v723_v22 }
 0x50c   :  { %3123 = vmatmul.mubr.f32.vlgmr.msra.gmra.mrb[6].mxu0 %v3089_v20  ;;  %v2806_v20 = vld [vmem:[%s4518_s4 + $0x63] ss:$0 sm:$0xff] }
 0x50d   :  { %3411 = vmatpush3.bf16.msra.mxu0 %v3408_v14  ;;  %3157 = vmatprep.mubr.f32.mxu0 %v529_v16 }
 0x50e   :  { %3413 = vmatprep.subr.bf16.mxu0 %v3412_v23 }
 0x511   :  { %3415 = vmatpush3.bf16.msra.mxu0 %v3412_v23 }
 0x512   :  { %3417 = vmatprep.subr.bf16.mxu0 %v3416_v26 }
 0x515   :  { %3419 = vmatpush3.bf16.msra.mxu0 %v3416_v26 }
 0x516   :  { %3421 = vmatprep.subr.bf16.mxu0 %v3420_v30 }
 0x519   :  { %3423 = vmatpush3.bf16.msra.mxu0 %v3420_v30 }
 0x51a   :  { %3425 = vmatprep.subr.bf16.mxu0 %v3424_v33 }
 0x51d   :  { %3427 = vmatpush3.bf16.msra.mxu0 %v3424_v33  ;;  %v3448_v33 = vpack.c.bf16 %v1057_v32, %v1056_v31 }
 0x51e   :  { %3429 = vmatprep.subr.bf16.mxu0 %v3428_v36 }
 0x521   :  { %3431 = vmatpush3.bf16.msra.mxu0 %v3428_v36  ;;  %v1060_v36 = vld [vmem:[%s4518_s4 + $0x40] sm:$0xff] }
 0x522   :  { %3433 = vmatprep.subr.bf16.mxu0 %v3432_v40 }
 0x525   :  { %3435 = vmatpush3.bf16.msra.mxu0 %v3432_v40  ;;  %v3456_v40 = vpack.c.bf16 %v1061_v39, %v1060_v36  ;;  %v2822_v36 = vld [vmem:[%s4516_s2 + $0x120] sm:$0xff]  ;;  %v2829_v39 = vld [vmem:[%s4516_s2 + $0x158] sm:$0xff] }
 0x526   :  { %3437 = vmatprep.subr.bf16.mxu0 %v3436_v43 }
 0x529   :  { %3439 = vmatpush3.bf16.msra.mxu0 %v3436_v43  ;;  %v3460_v43 = vpack.c.bf16 %v1063_v42, %v1062_v41  ;;  %v2828_v42 = vld [vmem:[%s4516_s2 + $0x150] sm:$0xff] }
 0x52c   :  { %3158 = vmatmul.mubr.f32.vlgmr.msra.gmra.mrb[6].mxu0 %v3075_v15 }
 0x5ff   :  { %v3159_v45 = vpop.f32.mrb[6].mxu0 }
 0x600   :  { %v905_v46 = vadd.f32 %v3159_v45, %v2805_v44  ;;  %v890_v47 = vpop.f32.mrb[7].mxu0 }
 0x601   :  { %v904_v48 = vadd.f32 %v2805_v44, %v890_v47  ;;  %v2808_v44 = vld [vmem:[%s4518_s4 + $0x60] ss:$0 sm:$0xff] }
 0x602   :  { %v907_v50 = vadd.f32 %v905_v46, %v3847_v2 }
 0x603   :  { %v906_v52 = vadd.f32 %v904_v48, %v3832_v59  ;;  %v948_v59 = vld [vmem:[%s4518_s4] sm:$0xff] }
 0x604   :  { %v913_v53 = vsel %vm28_vm0, %v907_v50, 0.0  ;;  %v3440_v5 = vpack.c.bf16 %v949_v1, %v948_v59 }
 0x605   :  { %914 = vadd.xlane.f32.xlu1 %v913_v53  ;;  %v910_v54 = vsel %vm28_vm0, %v906_v52, 0.0 }
 0x606   :  { %911 = vadd.xlane.f32.xlu0 %v910_v54  ;;  %3441 = vmatprep.subr.bf16.mxu1 %v3440_v5 }
 0x607   :  { %3443 = vmatpush3.bf16.msra.mxu1 %v3440_v5 }
 0x608   :  { %3445 = vmatprep.subr.bf16.mxu1 %v3444_v9 }
 0x60b   :  { %3447 = vmatpush3.bf16.msra.mxu1 %v3444_v9 }
 0x60c   :  { %3449 = vmatprep.subr.bf16.mxu1 %v3448_v33 }
 0x692   :  { %v915_v55 = vpop.xlane.xlu1 %914 }
 0x693   :  { %v917_v56 = vmul.f32 0.03125, %v915_v55  ;;  %v912_v57 = vpop.xlane.xlu0 %911 }
 0x694   :  { %v916_v58 = vmul.f32 0.03125, %v912_v57 }
 0x695   :  { %v919_v60 = vsub.f32 %v907_v50, %v917_v56 }
 0x696   :  { %v918_v61 = vsub.f32 %v906_v52, %v916_v58 }
 0x697   :  { %v921_v62 = vmul.f32 %v919_v60, %v919_v60 }
 0x698   :  { %v920_v63 = vmul.f32 %v918_v61, %v918_v61 }
 0x699   :  { %v925_v0 = vsel %vm28_vm0, %v921_v62, 0.0 }
 0x69a   :  { %926 = vadd.xlane.f32.xlu1 %v925_v0  ;;  %v922_v2 = vsel %vm28_vm0, %v920_v63, 0.0 }
 0x69b   :  { %923 = vadd.xlane.f32.xlu0 %v922_v2 }
 0x727   :  { %v927_v37 = vpop.xlane.xlu1 %926 }
 0x728   :  { %v929_v13 = vmul.f32 0.03125, %v927_v37  ;;  %v924_v14 = vpop.xlane.xlu0 %923 }
 0x729   :  { %v928_v15 = vmul.f32 0.03125, %v924_v14 }
 0x72a   :  { %v931_v16 = vadd.f32 1e-12, %v929_v13 }
 0x72b   :  { %v930_v17 = vadd.f32 1e-12, %v928_v15 }
 0x72c   :  { %3637 = vrsqrt.f32 %v931_v16 }
 0x72d   :  { %3639 = vrsqrt.f32 %v930_v17 }
 0x736   :  { %v3638_v18 = vpop.eup %3637 }
 0x737   :  { %v3640_v22 = vpop.eup %3639  ;;  %v935_v23 = vmul.f32 %v3638_v18, %v919_v60 }
 0x738   :  { %v934_v24 = vmul.f32 %v3640_v22, %v918_v61 }
 0x739   :  { %v941_v26 = vmul.f32 %v2806_v20, %v935_v23 }
 0x73a   :  { %v940_v27 = vmul.f32 %v2806_v20, %v934_v24 }
 0x73b   :  { %v947_v30 = vadd.f32 %v2807_v25, %v941_v26 }
 0x73c   :  { %v946_v28 = vadd.f32 %v2807_v25, %v940_v27 }
 0x73e   :  { %3168 = vmatprep.mubr.msk.f32.mxu1 %vm28_vm0, %v946_v28 }
 0x73f   :  { %3169 = vmatmul.mubr.msk.f32.vlgmr.msra.gmra.mrb[14].mxu1 %vm28_vm0, %v947_v30 }
 0x740   :  { %3451 = vmatpush3.bf16.msra.mxu1 %v3448_v33  ;;  %v2823_v33 = vld [vmem:[%s4516_s2 + $0x128] sm:$0xff] }
 0x741   :  { %3453 = vmatprep.subr.bf16.mxu1 %v3452_v38 }
 0x744   :  { %3455 = vmatpush3.bf16.msra.mxu1 %v3452_v38  ;;  %v3466_v38 = vpack.c.bf16 %v2822_v36, %v2816_v35 }
 0x745   :  { %3457 = vmatprep.subr.bf16.mxu1 %v3456_v40 }
 0x748   :  { %3459 = vmatpush3.bf16.msra.mxu1 %v3456_v40  ;;  %v2835_v40 = vld [vmem:[%s4516_s2 + $0x188] sm:$0xff] }
 0x749   :  { %3461 = vmatprep.subr.bf16.mxu1 %v3460_v43  ;;  %v3468_v41 = vpack.c.bf16 %v2835_v40, %v2829_v39 }
 0x74c   :  { %3463 = vmatpush3.bf16.msra.mxu1 %v3460_v43  ;;  %v2834_v43 = vld [vmem:[%s4516_s2 + $0x180] sm:$0xff] }
 0x812   :  { %v3170_v45 = vpop.f32.mrb[14].mxu1 }
 0x813   :  { %v1035_v46 = vadd.f32 %v3170_v45, %v2808_v44  ;;  %v1029_v47 = vpop.f32.mrb[15].mxu1  ;;  %v2819_v45 = vld [vmem:[%s4516_s2 + $0x108] sm:$0xff] }
 0x814   :  { %v1030_v48 = vadd.f32 %v2808_v44, %v1029_v47  ;;  %v3470_v44 = vpack.c.bf16 %v2834_v43, %v2828_v42 }
 0x815   :  { %v1041_v50 = vmul.f32 0.044715, %v1035_v46  ;;  %v1039_v1 = vmul.f32 0.5, %v1035_v46 }
 0x816   :  { %v1040_v52 = vmul.f32 0.044715, %v1030_v48  ;;  %v1038_v2 = vmul.f32 0.5, %v1030_v48 }
 0x817   :  { %v1043_v53 = vmul.f32 %v1041_v50, %v1035_v46 }
 0x818   :  { %v1042_v54 = vmul.f32 %v1040_v52, %v1030_v48 }
 0x819   :  { %v1045_v55 = vmul.f32 %v1043_v53, %v1035_v46 }
 0x81a   :  { %v1044_v56 = vmul.f32 %v1042_v54, %v1030_v48 }
 0x81b   :  { %v1047_v57 = vadd.f32 %v1045_v55, %v1035_v46  ;;  %v2825_v46 = vld [vmem:[%s4516_s2 + $0x138] sm:$0xff] }
 0x81c   :  { %v1046_v58 = vadd.f32 %v1044_v56, %v1030_v48  ;;  %v3472_v47 = vpack.c.bf16 %v2825_v46, %v2819_v45 }
 0x81d   :  { %v1049_v60 = vmul.f32 0.7978846, %v1047_v57 }
 0x81e   :  { %v1048_v61 = vmul.f32 0.7978846, %v1046_v58  ;;  %v2814_v58 = vld [vmem:[%s4518_s4 + $0x65] ss:$0 sm:$0xff] }
 0x81f   :  { %3641 = vtanh.f32 %v1049_v60 }
 0x820   :  { %3643 = vtanh.f32 %v1048_v61  ;;  %v2818_v61 = vld [vmem:[%s4516_s2 + $0x100] sm:$0xff] }
 0x829   :  { %v3642_v62 = vpop.eup %3641 }
 0x82a   :  { %v3644_v63 = vpop.eup %3643  ;;  %v1053_v0 = vadd.f32 1.0, %v3642_v62  ;;  %v2824_v62 = vld [vmem:[%s4516_s2 + $0x130] sm:$0xff] }
 0x82b   :  { %v1052_v59 = vadd.f32 1.0, %v3644_v63 }
 0x82c   :  { %v1055_v6 = vmul.f32 %v1053_v0, %v1039_v1  ;;  %v2815_v0 = vld [vmem:[%s4518_s4 + $0x66] ss:$0 sm:$0xff] }
 0x82d   :  { %v1054_v5 = vmul.f32 %v1052_v59, %v1038_v2  ;;  %v2831_v2 = vld [vmem:[%s4516_s2 + $0x168] sm:$0xff]  ;;  %v2837_v59 = vld [vmem:[%s4516_s2 + $0x198] sm:$0xff] }
 0x82f   :  { %3187 = vmatprep.mubr.msk.f32.mxu1 %vm1069_vm2, %v1054_v5  ;;  %v3474_v5 = vpack.c.bf16 %v2824_v62, %v2818_v61 }
 0x830   :  { %3188 = vmatmul.mubr.msk.f32.vlgmr.msra.gmra.mrb[16].mxu1 %vm1069_vm2, %v1055_v6 }
 0x831   :  { %1323 = vmatprep.mubr.f32.mxu1 %v3705_v21 }
 0x903   :  { %v3189_v9 = vpop.f32.mrb[16].mxu1 }
 0x904   :  { %v1148_v37 = vadd.f32 %v3189_v9, %v2811_v7  ;;  %v1142_v13 = vpop.f32.mrb[17].mxu1  ;;  %v3476_v9 = vpack.c.bf16 %v2837_v59, %v2831_v2 }
 0x905   :  { %v1143_v14 = vadd.f32 %v2811_v7, %v1142_v13  ;;  %v2836_v13 = vld [vmem:[%s4516_s2 + $0x190] sm:$0xff] }
 0x906   :  { %v1152_v15 = vadd.f32 %v1148_v37, %v947_v30  ;;  %v2830_v37 = vld [vmem:[%s4516_s2 + $0x160] sm:$0xff] }
 0x907   :  { %v1151_v16 = vadd.f32 %v1143_v14, %v946_v28  ;;  %v2817_v28 = vld [vmem:[%s4516_s2 + $0xf8] sm:$0xff] }
 0x908   :  { %v1158_v17 = vsel %vm28_vm0, %v1152_v15, 0.0  ;;  %v3464_v34 = vpack.c.bf16 %v2823_v33, %v2817_v28  ;;  %v2821_v14 = vld [vmem:[%s4516_s2 + $0x118] sm:$0xff] }
 0x909   :  { %1159 = vadd.xlane.f32.xlu1 %v1158_v17  ;;  %v1155_v18 = vsel %vm28_vm0, %v1151_v16, 0.0  ;;  %v2841_v28 = vld [vmem:[%s4516_s2 + $0x1b0] ss:$8 sm:$0x30] }
 0x90a   :  { %1156 = vadd.xlane.f32.xlu0 %v1155_v18  ;;  %3465 = vmatprep.subr.bf16.mxu1 %v3464_v34 }
 0x90b   :  { %3467 = vmatpush1.bf16.msra.mxu1 %v3466_v38 }
 0x90c   :  { %3469 = vmatprep.subr.bf16.mxu1 %v3468_v41 }
 0x90f   :  { %3471 = vmatpush1.bf16.msra.mxu1 %v3470_v44 }
 0x910   :  { %3473 = vmatprep.subr.bf16.mxu1 %v3472_v47 }
 0x996   :  { %v1160_v20 = vpop.xlane.xlu1 %1159 }
 0x997   :  { %v1162_v22 = vmul.f32 0.03125, %v1160_v20  ;;  %v1157_v23 = vpop.xlane.xlu0 %1156  ;;  %v2820_v20 = vld [vmem:[%s4516_s2 + $0x110] sm:$0xff] }
 0x998   :  { %v1161_v24 = vmul.f32 0.03125, %v1157_v23  ;;  %v2833_v23 = vld [vmem:[%s4516_s2 + $0x178] sm:$0xff] }
 0x999   :  { %v1164_v25 = vsub.f32 %v1152_v15, %v1162_v22  ;;  %v2827_v15 = vld [vmem:[%s4516_s2 + $0x148] sm:$0xff]  ;;  %v2826_v22 = vld [vmem:[%s4516_s2 + $0x140] sm:$0xff] }
 0x99a   :  { %v1163_v26 = vsub.f32 %v1151_v16, %v1161_v24  ;;  %v3478_v16 = vpack.c.bf16 %v2836_v13, %v2830_v37  ;;  %v3480_v18 = vpack.c.bf16 %v2827_v15, %v2821_v14  ;;  %v2839_v24 = vld [vmem:[%s4516_s2 + $0x1a8] sm:$0xff] }
 0x99b   :  { %v1166_v27 = vmul.f32 %v1164_v25, %v1164_v25 }
 0x99c   :  { %v1165_v31 = vmul.f32 %v1163_v26, %v1163_v26 }
 0x99d   :  { %v1170_v32 = vsel %vm28_vm0, %v1166_v27, 0.0  ;;  %v2832_v27 = vld [vmem:[%s4516_s2 + $0x170] sm:$0xff] }
 0x99e   :  { %1171 = vadd.xlane.f32.xlu1 %v1170_v32  ;;  %v1167_v30 = vsel %vm28_vm0, %v1165_v31, 0.0  ;;  %v2838_v31 = vld [vmem:[%s4516_s2 + $0x1a0] sm:$0xff] }
 0x99f   :  { %1168 = vadd.xlane.f32.xlu0 %v1167_v30  ;;  %v3486_v32 = vpack.c.bf16 %v2838_v31, %v2832_v27  ;;  %v2840_v30 = vld [vmem:[%s4516_s2 + $0x1b0] ss:$8 sm:$0xf] }
 0x9a0   :  { %v4185_v33 = vor.u32 %v2841_v28, %v2840_v30 }
 0x9a2   :  { %v1226_v34 = vrot.slane %v4185_v33, %v3869_v8  ;;  %v1230_v39 = vrot.slane %v4185_v33, %v3874_v11  ;;  %v1234_v46 = vrot.slane %v4185_v33, %v102_v29  ;;  %v1246_v29 = vrot.slane %v4185_v33, %v114_v12 }
 0xa2b   :  { %v1172_v48 = vpop.xlane.xlu1 %1171 }
 0xa2c   :  { %v1174_v50 = vmul.f32 0.03125, %v1172_v48  ;;  %v1169_v52 = vpop.xlane.xlu0 %1168 }
 0xa2d   :  { %v1173_v53 = vmul.f32 0.03125, %v1169_v52 }
 0xa2e   :  { %v1176_v54 = vadd.f32 1e-12, %v1174_v50 }
 0xa2f   :  { %v1175_v55 = vadd.f32 1e-12, %v1173_v53 }
 0xa30   :  { %3645 = vrsqrt.f32 %v1176_v54 }
 0xa31   :  { %3647 = vrsqrt.f32 %v1175_v55 }
 0xa3a   :  { %v3646_v56 = vpop.eup %3645 }
 0xa3b   :  { %v3648_v57 = vpop.eup %3647  ;;  %v1180_v63 = vmul.f32 %v3646_v56, %v1164_v25  ;;  %v3482_v25 = vpack.c.bf16 %v2826_v22, %v2820_v20 }
 0xa3c   :  { %v1179_v60 = vmul.f32 %v3648_v57, %v1163_v26  ;;  %v3484_v26 = vpack.c.bf16 %v2839_v24, %v2833_v23  ;;  %v1242_v57 = vrot.slane %v4185_v33, %v110_v10 }
 0xa3d   :  { %v1186_v7 = vmul.f32 %v2814_v58, %v1180_v63 }
 0xa3e   :  { %v1185_v1 = vmul.f32 %v2814_v58, %v1179_v60 }
 0xa3f   :  { %v4145_v17 = vadd.f32 %v2815_v0, %v1186_v7 }
 0xa40   :  { %v4128_v6 = vadd.f32 %v2815_v0, %v1185_v1 }
 0xa42   :  { %2842 = vmatmul.mubr.msk.f32.vlgmr.msra.gmra.mrb[18].mxu1 %vm28_vm0, %v4128_v6 }
 0xa43   :  { %3475 = vmatpush1.bf16.msra.mxu1 %v3474_v5  ;;  %1329 = vmatprep.mubr.f32.mxu1 %v3705_v21 }
 0xa44   :  { %3477 = vmatprep.subr.bf16.mxu1 %v3476_v9 }
 0xa46   :  { %2843 = vmatmul.mubr.msk.f32.gmra.mrb[20].mxu1 %vm28_vm0, %v4145_v17 }
 0xa47   :  { %3479 = vmatpush1.bf16.msra.mxu1 %v3478_v16  ;;  %1400 = vmatprep.mubr.f32.mxu1 %v3705_v21 }
 0xa48   :  { %3481 = vmatprep.subr.bf16.mxu1 %v3480_v18 }
 0xa4a   :  { %2844 = vmatmul.mubr.msk.f32.vlgmr.msra.gmra.mrb[22].mxu1 %vm28_vm0, %v4128_v6 }
 0xa4b   :  { %3483 = vmatpush1.bf16.msra.mxu1 %v3482_v25  ;;  %1406 = vmatprep.mubr.f32.mxu1 %v3705_v21 }
 0xa4c   :  { %3485 = vmatprep.subr.bf16.mxu1 %v3484_v26 }
 0xa4e   :  { %2845 = vmatmul.mubr.msk.f32.gmra.mrb[24].mxu1 %vm28_vm0, %v4145_v17 }
 0xa4f   :  { %3487 = vmatpush1.bf16.msra.mxu1 %v3486_v32  ;;  %1477 = vmatprep.mubr.f32.mxu1 %v3705_v21  ;;  %v1238_v32 = vrot.slane %v4185_v33, %v106_v19 }
 0xa52   :  { %2846 = vmatmul.mubr.msk.f32.vlgmr.msra.gmra.mrb[26].mxu1 %vm28_vm0, %v4128_v6 }
 0xa53   :  { %1483 = vmatprep.mubr.f32.mxu1 %v3705_v21 }
 0xa56   :  { %2847 = vmatmul.mubr.msk.f32.gmra.mrb[28].mxu1 %vm28_vm0, %v4145_v17 }
 0xb15   :  { %v1325_v35 = vpop.f32.mrb[18].mxu1 }
 0xb16   :  { %v1326_v36 = vadd.f32 %v1325_v35, %v1226_v34  ;;  %v1327_v38 = vpop.f32.mrb[19].mxu1 }
 0xb17   :  { %v1328_v42 = vadd.f32 %v1327_v38, %v1230_v39 }
 0xb18   :  { %3194 = vmatprep.mubr.f32.mxu1 %v1326_v36 }
 0xb19   :  { %v1331_v40 = vpop.f32.mrb[20].mxu1 }
 0xb1a   :  { %v1333_v41 = vpop.f32.mrb[21].mxu1  ;;  %v1332_v55 = vadd.f32 %v1331_v40, %v1226_v34 }
 0xb1b   :  { %v1334_v43 = vadd.f32 %v1333_v41, %v1230_v39 }
 0xb1d   :  { %v3488_v44 = vpack.c.bf16 %v1334_v43, %v1328_v42  ;;  %v1402_v45 = vpop.f32.mrb[22].mxu1 }
 0xb1e   :  { %v1404_v47 = vpop.f32.mrb[23].mxu1  ;;  %v1403_v50 = vadd.f32 %v1402_v45, %v1234_v46 }
 0xb1f   :  { %3489 = vmatprep.subr.bf16.mxu1 %v3488_v44  ;;  %v1405_v35 = vadd.f32 %v1404_v47, %v1238_v32 }
 0xb20   :  { %3491 = vmatpush3.bf16.xpose.msra.mxu1 %v3488_v44 }
 0xb21   :  { %v1408_v48 = vpop.f32.mrb[24].mxu1 }
 0xb22   :  { %v1409_v52 = vadd.f32 %v1408_v48, %v1234_v46  ;;  %v1410_v53 = vpop.f32.mrb[25].mxu1 }
 0xb23   :  { %v1411_v36 = vadd.f32 %v1410_v53, %v1238_v32  ;;  %v2868_v53 = vld [vmem:[%s4517_s3 + $0x180] sm:$0xff]  ;;  %v2853_v32 = vld [vmem:[%s4517_s3 + $0x118] sm:$0xff] }
 0xb24   :  { %v3492_v54 = vpack.c.bf16 %v1409_v52, %v1403_v50 }
 0xb25   :  { %v1479_v56 = vpop.f32.mrb[26].mxu1 }
 0xb26   :  { %v1481_v58 = vpop.f32.mrb[27].mxu1  ;;  %3493 = vmatprep.subr.bf16.mxu1 %v3492_v54  ;;  %v1480_v61 = vadd.f32 %v1479_v56, %v1242_v57 }
 0xb27   :  { %3195 = vmatmul.mubr.f32.vlgmr.msra.gmra.mrb[30].mxu1 %v1332_v55  ;;  %v1482_v0 = vadd.f32 %v1481_v58, %v1246_v29 }
 0xb28   :  { %3495 = vmatpush3.bf16.msra.mxu1 %v3492_v54  ;;  %v2869_v54 = vld [vmem:[%s4517_s3 + $0x188] sm:$0xff] }
 0xb29   :  { %v1485_v60 = vpop.f32.mrb[28].mxu1  ;;  %v3504_v55 = vpack.c.bf16 %v2869_v54, %v2868_v53 }
 0xb2a   :  { %v1486_v62 = vadd.f32 %v1485_v60, %v1242_v57  ;;  %v1487_v63 = vpop.f32.mrb[29].mxu1  ;;  %v2871_v60 = vld [vmem:[%s4517_s3 + $0x198] sm:$0xff] }
 0xb2b   :  { %v1488_v2 = vadd.f32 %v1487_v63, %v1246_v29  ;;  %v2870_v29 = vld [vmem:[%s4517_s3 + $0x190] sm:$0xff] }
 0xb2c   :  { %v3496_v59 = vpack.c.bf16 %v1486_v62, %v1480_v61 }
 0xb2d   :  { %v3500_v1 = vpack.c.bf16 %v1488_v2, %v1482_v0  ;;  %v3508_v0 = vpack.c.bf16 %v2871_v60, %v2870_v29  ;;  %v2872_v2 = vld [vmem:[%s4517_s3 + $0x1a0] sm:$0xff] }
 0xb2e   :  { %3497 = vmatprep.subr.bf16.mxu1 %v3496_v59 }
 0xb2f   :  { %3501 = vmatprep.subr.bf16.mxu0 %v3500_v1 }
 0xb30   :  { %3503 = vmatpush3.bf16.msra.mxu0 %v3500_v1 }
 0xb31   :  { %3505 = vmatprep.subr.bf16.mxu0 %v3504_v55 }
 0xbfa   :  { %v3196_v10 = vpop.f32.mrb[30].mxu1 }
 0xbfb   :  { %v1562_v5 = vadd.f32 %v3196_v10, %v3894_v49  ;;  %v1556_v7 = vpop.f32.mrb[31].mxu1  ;;  %v2874_v10 = vld [vmem:[%s4517_s3 + $0x1b0] sm:$0xff] }
 0xbfc   :  { %v1557_v9 = vadd.f32 %v1556_v7, %v3899_v51 }
 0xbfd   :  { %v1568_v12 = vsel %vm434_vm1, %v1562_v5, -inf }
 0xbfe   :  { %1569 = vmax.xlane.f32.xlu1 %v1568_v12  ;;  %v1565_v37 = vsel %vm434_vm1, %v1557_v9, -inf  ;;  %v2877_v12 = vld [vmem:[%s4517_s3 + $0x1c8] sm:$0xff] }
 0xbff   :  { %1566 = vmax.xlane.f32.xlu0 %v1565_v37 }
 0xc8b   :  { %v1570_v13 = vpop.xlane.xlu1 %1569 }
 0xc8c   :  { %v1572_v14 = vsub.f32 %v1562_v5, %v1570_v13  ;;  %v1567_v15 = vpop.xlane.xlu0 %1566  ;;  %v2875_v5 = vld [vmem:[%s4517_s3 + $0x1b8] sm:$0xff]  ;;  %v2878_v13 = vld [vmem:[%s4517_s3 + $0x1d0] sm:$0xff] }
 0xc8d   :  { %v1571_v16 = vsub.f32 %v1557_v9, %v1567_v15  ;;  %v3516_v7 = vpack.c.bf16 %v2875_v5, %v2874_v10  ;;  %v2876_v9 = vld [vmem:[%s4517_s3 + $0x1c0] sm:$0xff]  ;;  %v2891_v5 = vld [vmem:[%s4518_s4 + $0x70] sm:$0xff] }
 0xc8e   :  { %v1575_v18 = vmul.f32 1.442695, %v1572_v14  ;;  %v3520_v37 = vpack.c.bf16 %v2877_v12, %v2876_v9  ;;  %v2879_v14 = vld [vmem:[%s4517_s3 + $0x1d8] sm:$0xff]  ;;  %v2893_v12 = vld [vmem:[%s4518_s4 + $0x80] sm:$0xff] }
 0xc8f   :  { %v1573_v20 = vmul.f32 1.442695, %v1571_v16  ;;  %v3524_v15 = vpack.c.bf16 %v2879_v14, %v2878_v13  ;;  %v2880_v16 = vld [vmem:[%s4517_s3 + $0x1e0] sm:$0xff]  ;;  %v2892_v9 = vld [vmem:[%s4518_s4 + $0x78] sm:$0xff] }
 0xc90   :  { %3649 = vpow2.f32 %v1575_v18  ;;  %v2881_v18 = vld [vmem:[%s4517_s3 + $0x1e8] sm:$0xff] }
 0xc91   :  { %3651 = vpow2.f32 %v1573_v20  ;;  %v3528_v20 = vpack.c.bf16 %v2881_v18, %v2880_v16 }
 0xc9a   :  { %v3650_v22 = vpop.eup %3649 }
 0xc9b   :  { %v3652_v23 = vpop.eup %3651  ;;  %v1580_v24 = vsel %vm434_vm1, %v3650_v22, 0.0 }
 0xc9c   :  { %1581 = vadd.xlane.f32.xlu1 %v1580_v24  ;;  %v1577_v25 = vsel %vm434_vm1, %v3652_v23, 0.0 }
 0xc9d   :  { %1578 = vadd.xlane.f32.xlu0 %v1577_v25  ;;  %v2850_v25 = vld [vmem:[%s4517_s3 + $0x100] sm:$0xff] }
 0xd29   :  { %v1582_v26 = vpop.xlane.xlu1 %1581 }
 0xd2a   :  { %3653 = vrcp.f32 %v1582_v26  ;;  %v1579_v27 = vpop.xlane.xlu0 %1578  ;;  %v2851_v26 = vld [vmem:[%s4517_s3 + $0x108] sm:$0xff] }
 0xd2b   :  { %3655 = vrcp.f32 %v1579_v27  ;;  %v3536_v27 = vpack.c.bf16 %v2851_v26, %v2850_v25 }
 0xd34   :  { %v3654_v31 = vpop.eup %3653 }
 0xd35   :  { %v3656_v30 = vpop.eup %3655  ;;  %v1586_v34 = vmul.f32 %v3654_v31, %v3650_v22  ;;  %v2882_v22 = vld [vmem:[%s4517_s3 + $0x1f0] sm:$0xff] }
 0xd36   :  { %v1585_v28 = vmul.f32 %v3656_v30, %v3652_v23  ;;  %v2883_v23 = vld [vmem:[%s4517_s3 + $0x1f8] sm:$0xff]  ;;  %v2852_v31 = vld [vmem:[%s4517_s3 + $0x110] sm:$0xff] }
 0xd37   :  { %v3532_v24 = vpack.c.bf16 %v2883_v23, %v2882_v22  ;;  %v2888_v23 = vld [vmem:[%s4518_s4 + $0xcb] ss:$0 sm:$0xff] }
 0xd38   :  { %3201 = vmatprep.mubr.msk.f32.mxu1 %vm434_vm1, %v1585_v28 }
 0xd39   :  { %3202 = vmatmul.mubr.msk.f32.vlgmr.msra.gmra.mrb[32].mxu1 %vm434_vm1, %v1586_v34  ;;  %v3540_v34 = vpack.c.bf16 %v2853_v32, %v2852_v31 }
 0xd3a   :  { %3499 = vmatpush3.bf16.xpose.msra.mxu1 %v3496_v59  ;;  %3208 = vmatprep.mubr.f32.mxu1 %v1405_v35  ;;  %v2873_v59 = vld [vmem:[%s4517_s3 + $0x1a8] sm:$0xff]  ;;  %v2854_v35 = vld [vmem:[%s4517_s3 + $0x120] sm:$0xff] }
 0xd3b   :  { %v3512_v1 = vpack.c.bf16 %v2873_v59, %v2872_v2 }
 0xd41   :  { %3209 = vmatmul.mubr.f32.vlgmr.msra.gmra.mrb[34].mxu1 %v1411_v36  ;;  %v2855_v36 = vld [vmem:[%s4517_s3 + $0x128] sm:$0xff] }
 0xe0c   :  { %v4211_v38 = vpop.f32.mrb[32].mxu1 }
 0xe0d   :  { %v4213_v39 = vpop.f32.mrb[33].mxu1 }
 0xe14   :  { %v3210_v40 = vpop.f32.mrb[34].mxu1 }
 0xe15   :  { %v1757_v4 = vadd.f32 %v3210_v40, %v3894_v49  ;;  %v1751_v19 = vpop.f32.mrb[35].mxu1  ;;  %v3544_v40 = vpack.c.bf16 %v2855_v36, %v2854_v35  ;;  %v2899_v35 = vld [vmem:[%s4518_s4 + $0x90] sm:$0xff] }
 0xe16   :  { %v1752_v33 = vadd.f32 %v1751_v19, %v3899_v51  ;;  %v2857_v19 = vld [vmem:[%s4517_s3 + $0x138] sm:$0xff] }
 0xe17   :  { %v1763_v41 = vsel %vm434_vm1, %v1757_v4, -inf }
 0xe18   :  { %1764 = vmax.xlane.f32.xlu1 %v1763_v41  ;;  %v1760_v42 = vsel %vm434_vm1, %v1752_v33, -inf  ;;  %v2858_v41 = vld [vmem:[%s4517_s3 + $0x140] sm:$0xff] }
 0xe19   :  { %1761 = vmax.xlane.f32.xlu0 %v1760_v42 }
 0xea5   :  { %v1765_v43 = vpop.xlane.xlu1 %1764 }
 0xea6   :  { %v1767_v44 = vsub.f32 %v1757_v4, %v1765_v43  ;;  %v1762_v45 = vpop.xlane.xlu0 %1761  ;;  %v2856_v4 = vld [vmem:[%s4517_s3 + $0x130] sm:$0xff] }
 0xea7   :  { %v1766_v46 = vsub.f32 %v1752_v33, %v1762_v45  ;;  %v3548_v33 = vpack.c.bf16 %v2857_v19, %v2856_v4  ;;  %v2860_v43 = vld [vmem:[%s4517_s3 + $0x150] sm:$0xff]  ;;  %v2901_v4 = vld [vmem:[%s4518_s4 + $0xa0] sm:$0xff]  ;;  %v2902_v19 = vld [vmem:[%s4518_s4 + $0xa8] sm:$0xff] }
 0xea8   :  { %v1770_v47 = vmul.f32 1.442695, %v1767_v44  ;;  %v2861_v44 = vld [vmem:[%s4517_s3 + $0x158] sm:$0xff] }
 0xea9   :  { %v1768_v48 = vmul.f32 1.442695, %v1766_v46  ;;  %v3556_v45 = vpack.c.bf16 %v2861_v44, %v2860_v43  ;;  %v2862_v46 = vld [vmem:[%s4517_s3 + $0x160] sm:$0xff] }
 0xeaa   :  { %3657 = vpow2.f32 %v1770_v47  ;;  %v2863_v47 = vld [vmem:[%s4517_s3 + $0x168] sm:$0xff]  ;;  %v2905_v43 = vld [vmem:[%s4518_s4 + $0xc0] sm:$0xff] }
 0xeab   :  { %3659 = vpow2.f32 %v1768_v48  ;;  %v3560_v48 = vpack.c.bf16 %v2863_v47, %v2862_v46 }
 0xeb4   :  { %v3658_v50 = vpop.eup %3657 }
 0xeb5   :  { %v3660_v52 = vpop.eup %3659  ;;  %v1775_v49 = vsel %vm434_vm1, %v3658_v50, 0.0 }
 0xeb6   :  { %1776 = vadd.xlane.f32.xlu1 %v1775_v49  ;;  %v1772_v51 = vsel %vm434_vm1, %v3660_v52, 0.0 }
 0xeb7   :  { %1773 = vadd.xlane.f32.xlu0 %v1772_v51  ;;  %v2885_v51 = vld [vmem:[%s4518_s4 + $0xc9] ss:$0 sm:$0xff] }
 0xf43   :  { %v1777_v56 = vpop.xlane.xlu1 %1776 }
 0xf44   :  { %3661 = vrcp.f32 %v1777_v56  ;;  %v1774_v57 = vpop.xlane.xlu0 %1773 }
 0xf45   :  { %3663 = vrcp.f32 %v1774_v57 }
 0xf4e   :  { %v3662_v58 = vpop.eup %3661 }
 0xf4f   :  { %v3664_v61 = vpop.eup %3663  ;;  %v1781_v63 = vmul.f32 %v3662_v58, %v3658_v50  ;;  %v2864_v50 = vld [vmem:[%s4517_s3 + $0x170] sm:$0xff] }
 0xf50   :  { %v1780_v62 = vmul.f32 %v3664_v61, %v3660_v52  ;;  %v2865_v52 = vld [vmem:[%s4517_s3 + $0x178] sm:$0xff] }
 0xf51   :  { %v3564_v49 = vpack.c.bf16 %v2865_v52, %v2864_v50 }
 0xf52   :  { %3215 = vmatprep.mubr.msk.f32.mxu0 %vm434_vm1, %v1780_v62 }
 0xf53   :  { %3216 = vmatmul.mubr.msk.f32.vlgmr.msra.gmra.mrb[8].mxu0 %vm434_vm1, %v1781_v63 }
 0xf54   :  { %3507 = vmatpush3.bf16.msra.mxu0 %v3504_v55 }
 0xf55   :  { %3509 = vmatprep.subr.bf16.mxu0 %v3508_v0 }
 0xf58   :  { %3511 = vmatpush3.bf16.msra.mxu0 %v3508_v0 }
 0xf59   :  { %3513 = vmatprep.subr.bf16.mxu0 %v3512_v1 }
 0xf5c   :  { %3515 = vmatpush3.bf16.msra.mxu0 %v3512_v1 }
 0xf5d   :  { %3517 = vmatprep.subr.bf16.mxu0 %v3516_v7 }
 0xf60   :  { %3519 = vmatpush3.bf16.msra.mxu0 %v3516_v7 }
 0xf61   :  { %3521 = vmatprep.subr.bf16.mxu0 %v3520_v37 }
 0xf64   :  { %3523 = vmatpush3.bf16.msra.mxu0 %v3520_v37  ;;  %v3572_v37 = vpack.c.bf16 %v2893_v12, %v2892_v9 }
 0xf65   :  { %3525 = vmatprep.subr.bf16.mxu0 %v3524_v15 }
 0xf68   :  { %3527 = vmatpush3.bf16.msra.mxu0 %v3524_v15 }
 0xf69   :  { %3529 = vmatprep.subr.bf16.mxu0 %v3528_v20 }
 0xf6c   :  { %3531 = vmatpush3.bf16.msra.mxu0 %v3528_v20 }
 0xf6d   :  { %3533 = vmatprep.subr.bf16.mxu0 %v3532_v24 }
 0xf70   :  { %3535 = vmatpush3.bf16.msra.mxu0 %v3532_v24 }
 0xf71   :  { %3537 = vmatprep.subr.bf16.mxu0 %v3536_v27 }
0x1026   :  { %v3217_v30 = vpop.f32.mrb[8].mxu0 }
0x1027   :  { %v1854_v28 = vpop.f32.mrb[9].mxu0 }
0x1028   :  { %3250 = vmatprep.mubr.f32.mxu0 %v1854_v28 }
0x1029   :  { %3251 = vmatmul.mubr.f32.vlgmr.msra.gmra.mrb[10].mxu0 %v3217_v30 }
0x102a   :  { %3539 = vmatpush3.bf16.msra.mxu0 %v3536_v27  ;;  %3285 = vmatprep.mubr.f32.mxu0 %v4213_v39  ;;  %v2859_v39 = vld [vmem:[%s4517_s3 + $0x148] sm:$0xff] }
0x102b   :  { %3541 = vmatprep.subr.bf16.mxu0 %v3540_v34  ;;  %v3552_v42 = vpack.c.bf16 %v2859_v39, %v2858_v41  ;;  %v2889_v27 = vld [vmem:[%s4518_s4 + $0xcc] ss:$0 sm:$0xff]  ;;  %v2903_v41 = vld [vmem:[%s4518_s4 + $0xb0] sm:$0xff] }
0x102c   :  { %v3584_v39 = vpack.c.bf16 %v2903_v41, %v2902_v19 }
0x102e   :  { %3543 = vmatpush3.bf16.msra.mxu0 %v3540_v34  ;;  %v2898_v34 = vld [vmem:[%s4518_s4 + $0x88] sm:$0xff] }
0x102f   :  { %3545 = vmatprep.subr.bf16.mxu0 %v3544_v40  ;;  %v3576_v36 = vpack.c.bf16 %v2899_v35, %v2898_v34 }
0x1032   :  { %3547 = vmatpush3.bf16.msra.mxu0 %v3544_v40  ;;  %v2900_v40 = vld [vmem:[%s4518_s4 + $0x98] sm:$0xff] }
0x1033   :  { %3549 = vmatprep.subr.bf16.mxu0 %v3548_v33 }
0x1036   :  { %3551 = vmatpush3.bf16.msra.mxu0 %v3548_v33  ;;  %v3580_v33 = vpack.c.bf16 %v2901_v4, %v2900_v40 }
0x1037   :  { %3553 = vmatprep.subr.bf16.mxu0 %v3552_v42 }
0x103a   :  { %3555 = vmatpush3.bf16.msra.mxu0 %v3552_v42  ;;  %v2904_v42 = vld [vmem:[%s4518_s4 + $0xb8] sm:$0xff] }
0x103b   :  { %3557 = vmatprep.subr.bf16.mxu0 %v3556_v45  ;;  %v3588_v44 = vpack.c.bf16 %v2905_v43, %v2904_v42 }
0x103e   :  { %3559 = vmatpush3.bf16.msra.mxu0 %v3556_v45  ;;  %v2895_v45 = vld [vmem:[%s4518_s4 + $0xc8] ss:$0 sm:$0xff] }
0x103f   :  { %3561 = vmatprep.subr.bf16.mxu0 %v3560_v48 }
0x1042   :  { %3563 = vmatpush3.bf16.msra.mxu0 %v3560_v48 }
0x1043   :  { %3565 = vmatprep.subr.bf16.mxu0 %v3564_v49 }
0x1046   :  { %3567 = vmatpush3.bf16.msra.mxu0 %v3564_v49 }
0x1049   :  { %3286 = vmatmul.mubr.f32.vlgmr.msra.gmra.mrb[10].mxu0 %v4211_v38 }
0x111c   :  { %v3287_v53 = vpop.f32.mrb[10].mxu0 }
0x111d   :  { %v2037_v54 = vadd.f32 %v3287_v53, %v2885_v51  ;;  %v2021_v55 = vpop.f32.mrb[11].mxu0 }
0x111e   :  { %v2036_v56 = vadd.f32 %v2885_v51, %v2021_v55 }
0x111f   :  { %v2039_v57 = vadd.f32 %v2037_v54, %v4145_v17 }
0x1120   :  { %v2038_v58 = vadd.f32 %v2036_v56, %v4128_v6  ;;  %v2890_v6 = vld [vmem:[%s4518_s4 + $0x68] sm:$0xff] }
0x1121   :  { %v2045_v29 = vsel %vm28_vm0, %v2039_v57, 0.0  ;;  %v3568_v7 = vpack.c.bf16 %v2891_v5, %v2890_v6 }
0x1122   :  { %2046 = vadd.xlane.f32.xlu1 %v2045_v29  ;;  %v2042_v60 = vsel %vm28_vm0, %v2038_v58, 0.0 }
0x1123   :  { %2043 = vadd.xlane.f32.xlu0 %v2042_v60  ;;  %3569 = vmatprep.subr.bf16.mxu1 %v3568_v7 }
0x1124   :  { %3571 = vmatpush3.bf16.msra.mxu1 %v3568_v7 }
0x1125   :  { %3573 = vmatprep.subr.bf16.mxu1 %v3572_v37 }
0x1128   :  { %3575 = vmatpush3.bf16.msra.mxu1 %v3572_v37 }
0x1129   :  { %3577 = vmatprep.subr.bf16.mxu1 %v3576_v36 }
0x11af   :  { %v2047_v61 = vpop.xlane.xlu1 %2046 }
0x11b0   :  { %v2049_v38 = vmul.f32 0.03125, %v2047_v61  ;;  %v2044_v62 = vpop.xlane.xlu0 %2043 }
0x11b1   :  { %v2048_v63 = vmul.f32 0.03125, %v2044_v62 }
0x11b2   :  { %v2051_v0 = vsub.f32 %v2039_v57, %v2049_v38 }
0x11b3   :  { %v2050_v2 = vsub.f32 %v2038_v58, %v2048_v63 }
0x11b4   :  { %v2053_v59 = vmul.f32 %v2051_v0, %v2051_v0 }
0x11b5   :  { %v2052_v1 = vmul.f32 %v2050_v2, %v2050_v2 }
0x11b6   :  { %v2057_v10 = vsel %vm28_vm0, %v2053_v59, 0.0 }
0x11b7   :  { %2058 = vadd.xlane.f32.xlu1 %v2057_v10  ;;  %v2054_v17 = vsel %vm28_vm0, %v2052_v1, 0.0  ;;  %v2907_v1 = vld [vmem:[%s4518_s4 + $0xca] ss:$0 sm:$0xff] }
0x11b8   :  { %2055 = vadd.xlane.f32.xlu0 %v2054_v17 }
0x1244   :  { %v2059_v13 = vpop.xlane.xlu1 %2058 }
0x1245   :  { %v2061_v14 = vmul.f32 0.03125, %v2059_v13  ;;  %v2056_v15 = vpop.xlane.xlu0 %2055 }
0x1246   :  { %v2060_v16 = vmul.f32 0.03125, %v2056_v15 }
0x1247   :  { %v2063_v18 = vadd.f32 1e-12, %v2061_v14 }
0x1248   :  { %v2062_v20 = vadd.f32 1e-12, %v2060_v16 }
0x1249   :  { %3665 = vrsqrt.f32 %v2063_v18 }
0x124a   :  { %3667 = vrsqrt.f32 %v2062_v20 }
0x1253   :  { %v3666_v22 = vpop.eup %3665 }
0x1254   :  { %v3668_v24 = vpop.eup %3667  ;;  %v2067_v25 = vmul.f32 %v3666_v22, %v2051_v0 }
0x1255   :  { %v2066_v26 = vmul.f32 %v3668_v24, %v2050_v2 }
0x1256   :  { %v2073_v31 = vmul.f32 %v2888_v23, %v2067_v25 }
0x1257   :  { %v2072_v32 = vmul.f32 %v2888_v23, %v2066_v26  ;;  %v3706_v26 = vmov 0.0|0.0  }
0x1258   :  { %v2079_v28 = vadd.f32 %v2889_v27, %v2073_v31 }
0x1259   :  { %v2078_v30 = vadd.f32 %v2889_v27, %v2072_v32 }
0x125b   :  { %3296 = vmatprep.mubr.msk.f32.mxu1 %vm28_vm0, %v2078_v30 }
0x125c   :  { %3297 = vmatmul.mubr.msk.f32.vlgmr.msra.gmra.mrb[36].mxu1 %vm28_vm0, %v2079_v28 }
0x125d   :  { %3579 = vmatpush3.bf16.msra.mxu1 %v3576_v36  ;;  %v2912_v36 = vld [vmem:[%s4518_s4 + $0xcd] ss:$0 sm:$0xff] }
0x125e   :  { %3581 = vmatprep.subr.bf16.mxu1 %v3580_v33 }
0x1261   :  { %3583 = vmatpush3.bf16.msra.mxu1 %v3580_v33  ;;  %v2913_v33 = vld [vmem:[%s4518_s4 + $0xce] ss:$0 sm:$0xff] }
0x1262   :  { %3585 = vmatprep.subr.bf16.mxu1 %v3584_v39 }
0x1265   :  { %3587 = vmatpush3.bf16.msra.mxu1 %v3584_v39 }
0x1266   :  { %3589 = vmatprep.subr.bf16.mxu1 %v3588_v44 }
0x1269   :  { %3591 = vmatpush3.bf16.msra.mxu1 %v3588_v44  ;;  %v2397_v44 = vld [vmem:[%s4519_s5 + $0x40] sm:$0xff] }
0x126a   :  { %3592 = vmatprep.subr.bf16.mxu1 %v3706_v26 }
0x132f   :  { %v3298_v46 = vpop.f32.mrb[36].mxu1 }
0x1330   :  { %v2167_v47 = vadd.f32 %v3298_v46, %v2895_v45  ;;  %v2161_v48 = vpop.f32.mrb[37].mxu1 }
0x1331   :  { %v2162_v50 = vadd.f32 %v2895_v45, %v2161_v48  ;;  %v2398_v45 = vld [vmem:[%s4519_s5 + $0x50] sm:$0xff] }
0x1332   :  { %v2173_v52 = vmul.f32 0.044715, %v2167_v47  ;;  %v2171_v0 = vmul.f32 0.5, %v2167_v47  ;;  %v3596_v48 = vpack.c.bf16 %v2398_v45, %v2397_v44 }
0x1333   :  { %v2172_v49 = vmul.f32 0.044715, %v2162_v50  ;;  %v2170_v62 = vmul.f32 0.5, %v2162_v50 }
0x1334   :  { %v2175_v51 = vmul.f32 %v2173_v52, %v2167_v47  ;;  %v2400_v52 = vld [vmem:[%s4519_s5 + $0x70] sm:$0xff] }
0x1335   :  { %v2174_v53 = vmul.f32 %v2172_v49, %v2162_v50 }
0x1336   :  { %v2177_v54 = vmul.f32 %v2175_v51, %v2167_v47 }
0x1337   :  { %v2176_v55 = vmul.f32 %v2174_v53, %v2162_v50 }
0x1338   :  { %v2179_v56 = vadd.f32 %v2177_v54, %v2167_v47  ;;  %v62_v47 = vld [vmem:[%s4515_s1 + $0x10] sm:$0x3]  ;;  %v2401_v54 = vld [vmem:[%s4519_s5 + $0x80] ss:$0 sm:$0xff] }
0x1339   :  { %v2178_v57 = vadd.f32 %v2176_v55, %v2162_v50  ;;  %v2399_v50 = vld [vmem:[%s4519_s5 + $0x60] sm:$0xff] }
0x133a   :  { %v2181_v58 = vmul.f32 0.7978846, %v2179_v56  ;;  %v3599_v49 = vpack.c.bf16 %v2400_v52, %v2399_v50 }
0x133b   :  { %v2180_v29 = vmul.f32 0.7978846, %v2178_v57 }
0x133c   :  { %3669 = vtanh.f32 %v2181_v58 }
0x133d   :  { %3671 = vtanh.f32 %v2180_v29 }
0x1346   :  { %v3670_v60 = vpop.eup %3669 }
0x1347   :  { %v3672_v61 = vpop.eup %3671  ;;  %v2185_v38 = vadd.f32 1.0, %v3670_v60 }
0x1348   :  { %v2184_v63 = vadd.f32 1.0, %v3672_v61 }
0x1349   :  { %v2187_v59 = vmul.f32 %v2185_v38, %v2171_v0 }
0x134a   :  { %v2186_v2 = vmul.f32 %v2184_v63, %v2170_v62 }
0x134c   :  { %3315 = vmatprep.mubr.msk.f32.mxu1 %vm1069_vm2, %v2186_v2 }
0x134d   :  { %3316 = vmatmul.mubr.msk.f32.vlgmr.msra.gmra.mrb[38].mxu1 %vm1069_vm2, %v2187_v59 }
0x134e   :  { %3322 = vmatprep.mubr.msk.f32.mxu1 %vm3707_vm3, %v3705_v21 }
0x1420   :  { %v3317_v10 = vpop.f32.mrb[38].mxu1 }
0x1421   :  { %v2279_v17 = vadd.f32 %v3317_v10, %v2907_v1  ;;  %v2273_v6 = vpop.f32.mrb[39].mxu1 }
0x1422   :  { %v2274_v5 = vadd.f32 %v2907_v1, %v2273_v6 }
0x1423   :  { %v2283_v7 = vadd.f32 %v2279_v17, %v2079_v28 }
0x1424   :  { %v2282_v9 = vadd.f32 %v2274_v5, %v2078_v30  ;;  %v2503_v5 = vld [vmem:[%s4519_s5 + $0x8] sm:$0xff] }
0x1425   :  { %v2289_v12 = vsel %vm28_vm0, %v2283_v7, 0.0 }
0x1426   :  { %2290 = vadd.xlane.f32.xlu1 %v2289_v12  ;;  %v2286_v37 = vsel %vm28_vm0, %v2282_v9, 0.0  ;;  %v2502_v12 = vld [vmem:[%s4519_s5] sm:$0xff] }
0x1427   :  { %2287 = vadd.xlane.f32.xlu0 %v2286_v37  ;;  %v2504_v37 = vld [vmem:[%s4519_s5 + $0x10] sm:$0xff] }
0x14b3   :  { %v2291_v13 = vpop.xlane.xlu1 %2290 }
0x14b4   :  { %v2293_v14 = vmul.f32 0.03125, %v2291_v13  ;;  %v2288_v15 = vpop.xlane.xlu0 %2287  ;;  %v3603_v13 = vpack.c.bf16 %v2504_v37, %v2502_v12 }
0x14b5   :  { %v2292_v16 = vmul.f32 0.03125, %v2288_v15  ;;  %v2509_v15 = vld [vmem:[%s4519_s5 + $0x38] sm:$0xff] }
0x14b6   :  { %v2295_v18 = vsub.f32 %v2283_v7, %v2293_v14  ;;  %v2505_v7 = vld [vmem:[%s4519_s5 + $0x18] sm:$0xff]  ;;  %v2507_v14 = vld [vmem:[%s4519_s5 + $0x28] sm:$0xff] }
0x14b7   :  { %v2294_v20 = vsub.f32 %v2282_v9, %v2292_v16  ;;  %v3601_v9 = vpack.c.bf16 %v2505_v7, %v2503_v5  ;;  %v3605_v16 = vpack.c.bf16 %v2509_v15, %v2507_v14 }
0x14b8   :  { %v2297_v22 = vmul.f32 %v2295_v18, %v2295_v18 }
0x14b9   :  { %v2296_v23 = vmul.f32 %v2294_v20, %v2294_v20 }
0x14ba   :  { %v2301_v24 = vsel %vm28_vm0, %v2297_v22, 0.0 }
0x14bb   :  { %2302 = vadd.xlane.f32.xlu1 %v2301_v24  ;;  %v2298_v25 = vsel %vm28_vm0, %v2296_v23, 0.0 }
0x14bc   :  { %2299 = vadd.xlane.f32.xlu0 %v2298_v25 }
0x1548   :  { %v2303_v27 = vpop.xlane.xlu1 %2302 }
0x1549   :  { %v2305_v31 = vmul.f32 0.03125, %v2303_v27  ;;  %v2300_v32 = vpop.xlane.xlu0 %2299  ;;  %v2484_v27 = vld [vmem:[%s4519_s5 + $0x82] ss:$0 sm:$0xff] }
0x154a   :  { %v2304_v30 = vmul.f32 0.03125, %v2300_v32  ;;  %v2485_v32 = vld [vmem:[%s4519_s5 + $0x83] ss:$0 sm:$0xff] }
0x154b   :  { %v2307_v28 = vadd.f32 1e-12, %v2305_v31 }
0x154c   :  { %v2306_v34 = vadd.f32 1e-12, %v2304_v30 }
0x154d   :  { %3673 = vrsqrt.f32 %v2307_v28 }
0x154e   :  { %3675 = vrsqrt.f32 %v2306_v34  ;;  %v2916_v34 = vld [vmem:[%s4519_s5 + $0x81] ss:$8 sm:$0x3] }
0x1557   :  { %v3674_v35 = vpop.eup %3673 }
0x1558   :  { %v3676_v40 = vpop.eup %3675  ;;  %v2311_v4 = vmul.f32 %v3674_v35, %v2295_v18  ;;  %v2506_v18 = vld [vmem:[%s4519_s5 + $0x20] sm:$0xff]  ;;  %v2516_v35 = vrot.slane %v2916_v34, %v3869_v8 }
0x1559   :  { %v2310_v19 = vmul.f32 %v3676_v40, %v2294_v20  ;;  %v2508_v20 = vld [vmem:[%s4519_s5 + $0x30] sm:$0xff]  ;;  %s3708_s5 = smov [#allocation2]  }
0x155a   :  { %v2317_v41 = vmul.f32 %v2912_v36, %v2311_v4  ;;  %v3607_v22 = vpack.c.bf16 %v2508_v20, %v2506_v18  ;;  %s2768_s14 = sshll.u32 %s3708_s5, 4  ;;  %s2769_s14 = int_to_ptr.vmem [resolvable:$true] %s2768_s14 }
0x155b   :  { %v2316_v39 = vmul.f32 %v2912_v36, %v2310_v19  ;;  %v2520_v36 = vrot.slane %v2916_v34, %v3874_v11  ;;  %s3681_s4 = scalar_lea.vmem %s2769_s14, 32  ;;  %p3686_p1 = scmp.lt.s32.totalorder %s2769_s14, %s2769_s14 }
0x155c   :  { %v2323_v42 = vadd.f32 %v2913_v33, %v2317_v41  ;;  %p3682_p0 = scmp.ne.s32.totalorder %s2769_s14, %s3681_s4  ;;  %p3687_p2 = scmp.lt.s32.totalorder %s3681_s4, %s3681_s4 }
0x155d   :  { %v2322_v43 = vadd.f32 %v2913_v33, %v2316_v39 }
0x155e   :  { %p3688_p3 = por %p3687_p2, %p3686_p1 }
0x155f   :  { %v3593_v46 = vpack.c.bf16 %v2323_v42, %v2322_v43  ;;  %v4456_v43 = vand.u32 127, %v92_v3 }
0x1560   :  { %p3689_p4 = pnand %p3688_p3, %p3682_p0 }
0x1561   :  { %3594 = vmatpush3.bf16.msra.mxu1 %v3593_v46  ;;  %v4459_v44 = vadd.s32 128, %v4456_v43 }
0x1562   :  { %3595 = vmatprep.subr.bf16.mxu1 %v3706_v26 }
0x1564   :  { %3323 = vmatmul.mubr.msk.f32.vlgmr.msra.gmra.mrb[40].mxu1 %vm434_vm1, %v62_v47 }
0x1565   :  { %3597 = vmatpush3.bf16.msra.mxu1 %v3596_v48  ;;  %3333 = vmatprep.mubr.msk.f32.mxu1 %vm3707_vm3, %v3705_v21 }
0x1566   :  { %3598 = vmatprep.subr.bf16.mxu1 %v3706_v26 }
0x1569   :  { %3600 = vmatpush3.bf16.msra.mxu1 %v3599_v49 }
0x156a   :  { %3602 = vmatprep.subr.bf16.mxu1 %v3601_v9 }
0x1637   :  { %v2393_v51 = vpop.f32.mrb[40].mxu1 }
0x1638   :  { %v3324_v53 = vpop.f32.mrb[41].mxu1  ;;  %3334 = vmatmul.mubr.msk.f32.vlgmr.msra.gmra.mrb[42].mxu1 %vm28_vm0, %v2393_v51 }
0x1639   :  { %2590 = vmatprep.mubr.f32.mxu1 %v3705_v21  ;;  %3604 = vmatpush1.bf16.msra.mxu1 %v3603_v13 }
0x163a   :  { %3606 = vmatprep.subr.bf16.mxu1 %v3605_v16 }
0x163d   :  { %3608 = vmatpush1.bf16.msra.mxu1 %v3607_v22 }
0x170b   :  { %v2471_v55 = vpop.f32.mrb[42].mxu1 }
0x170c   :  { %v2472_v56 = vadd.f32 %v2471_v55, %v2401_v54  ;;  %v3335_v57 = vpop.f32.mrb[43].mxu1 }
0x170e   :  { %v2476_v58 = vmul.f32 0.044715, %v2472_v56  ;;  %v2475_v63 = vmul.f32 0.5, %v2472_v56 }
0x1710   :  { %v2477_v29 = vmul.f32 %v2476_v58, %v2472_v56 }
0x1712   :  { %v2478_v60 = vmul.f32 %v2477_v29, %v2472_v56 }
0x1714   :  { %v2479_v61 = vadd.f32 %v2478_v60, %v2472_v56 }
0x1716   :  { %v2480_v38 = vmul.f32 0.7978846, %v2479_v61 }
0x1718   :  { %3677 = vtanh.f32 %v2480_v38 }
0x1722   :  { %v3678_v62 = vpop.eup %3677 }
0x1723   :  { %v2482_v0 = vadd.f32 1.0, %v3678_v62 }
0x1725   :  { %v2483_v2 = vmul.f32 %v2482_v0, %v2475_v63 }
0x1727   :  { %v2487_v59 = vsel %vm2486_vm4, %v2483_v2, 0.0 }
0x1728   :  { %2488 = vadd.xlane.f32.xlu0 %v2487_v59 }
0x17b5   :  { %v2489_v21 = vpop.xlane.xlu0 %2488 }
0x17b6   :  { %v2490_v1 = vmul.f32 0.03125, %v2489_v21 }
0x17b8   :  { %v2491_v10 = vsub.f32 %v2483_v2, %v2490_v1 }
0x17ba   :  { %v2492_v17 = vmul.f32 %v2491_v10, %v2491_v10 }
0x17bc   :  { %v2493_v6 = vsel %vm2486_vm4, %v2492_v17, 0.0 }
0x17bd   :  { %2494 = vadd.xlane.f32.xlu1 %v2493_v6 }
0x184a   :  { %v2495_v23 = vpop.xlane.xlu1 %2494 }
0x184b   :  { %v2496_v24 = vmul.f32 0.03125, %v2495_v23 }
0x184d   :  { %v2497_v25 = vadd.f32 1e-12, %v2496_v24 }
0x184f   :  { %3679 = vrsqrt.f32 %v2497_v25 }
0x1859   :  { %v3680_v26 = vpop.eup %3679 }
0x185a   :  { %v2499_v31 = vmul.f32 %v3680_v26, %v2491_v10 }
0x185c   :  { %v2500_v30 = vmul.f32 %v2499_v31, %v2484_v27 }
0x185e   :  { %v2501_v28 = vadd.f32 %v2500_v30, %v2485_v32 }
0x1860   :  { %2917 = vmatmul.mubr.msk.f32.vlgmr.msra.gmra.mrb[44].mxu1 %vm28_vm0, %v2501_v28 }
0x1933   :  { %v2592_v40 = vpop.f32.mrb[44].mxu1 }
0x1934   :  { %v2593_v4 = vadd.f32 %v2592_v40, %v2516_v35  ;;  %v2594_v19 = vpop.f32.mrb[45].mxu1 }
0x1935   :  { %v2595_v33 = vadd.f32 %v2594_v19, %v2520_v36 }
0x1936   :  { %v2601_v41 = vsel %vm2600_vm5, %v2593_v4, -inf }
0x1937   :  { %v2602_v39 = vsel %vm2600_vm5, %v2595_v33, -inf }
0x1938   :  { %v2603_v42 = vmax.f32 %v2601_v41, %v2602_v39 }
0x193a   :  { %2604 = vmax.xlane.f32.xlu0 %v2603_v42 }
0x19c7   :  { %v2605_v8 = vpop.xlane.xlu0 %2604 }
0x19c8   :  { %vm2606_vm6 = vcmp.eq.f32.partialorder %v2593_v4, %v2605_v8  ;;  %vm2607_vm7 = vcmp.eq.f32.partialorder %v2595_v33, %v2605_v8 }
0x19c9   :  { %v2608_v11 = vsel %vm2606_vm6, %v4456_v43, 256  ;;  %v2609_v45 = vsel %vm2607_vm7, %v4459_v44, 256  ;;  %vm2752_vm7 = vcmask 7168  }
0x19ca   :  { %v2610_v46 = vsel %vm2600_vm5, %v2608_v11, 2147483647  ;;  %v2611_v47 = vsel %vm2600_vm5, %v2609_v45, 2147483647 }
0x19cb   :  { %vm2612_vm8 = vcmp.lt.s32.totalorder %v2610_v46, %v2611_v47 }
0x19cc   :  { %v2613_v48 = vsel %vm2612_vm8, %v2610_v46, %v2611_v47  ;;  %vm2754_vm8 = vcmask 15360  }
0x19cd   :  { %v2615_v50 = vshra.s32 %v2613_v48, 16  ;;  %v2614_v3 = vand.u32 65535, %v2613_v48 }
0x19cf   :  { %v2617_v52 = vcvt.s32.f32 %v2615_v50  ;;  %v2616_v51 = vcvt.s32.f32 %v2614_v3 }
0x19d1   :  { %2618 = vmin.xlane.f32.xlu1 %v2617_v52 }
0x1a5e   :  { %v2619_v49 = vpop.xlane.xlu1 %2618 }
0x1a5f   :  { %vm2620_vm9 = vcmp.eq.f32.partialorder %v2617_v52, %v2619_v49  ;;  %v2625_v54 = vcvt.f32.s32 %v2619_v49 }
0x1a60   :  { %v2621_v53 = vsel %vm2620_vm9, %v2616_v51, inf }
0x1a61   :  { %2622 = vmin.xlane.f32.xlu0 %v2621_v53  ;;  %v2626_v56 = vshll.u32 %v2625_v54, 16 }
0x1aee   :  { %v2623_v55 = vpop.xlane.xlu0 %2622 }
0x1aef   :  { %v2624_v57 = vcvt.f32.s32 %v2623_v55 }
0x1af1   :  { %v4465_v58 = vadd.s32 %v2626_v56, %v2624_v57 }
0x1af3   :  { %vm2628_vm10 = vcmp.eq.s32.totalorder %v4456_v43, %v4465_v58  ;;  %vm2629_vm11 = vcmp.eq.s32.totalorder %v4459_v44, %v4465_v58 }
0x1af4   :  { %v2630_v29 = vsel %vm2628_vm10, -inf, %v2593_v4  ;;  %v2631_v60 = vsel %vm2629_vm11, -inf, %v2595_v33 }
0x1af5   :  { %v2632_v61 = vsel %vm2600_vm5, %v2630_v29, -inf  ;;  %v2633_v38 = vsel %vm2600_vm5, %v2631_v60, -inf }
0x1af6   :  { %v2634_v62 = vmax.f32 %v2632_v61, %v2633_v38 }
0x1af8   :  { %2635 = vmax.xlane.f32.xlu1 %v2634_v62 }
0x1b85   :  { %v2636_v63 = vpop.xlane.xlu1 %2635 }
0x1b86   :  { %vm2637_vm12 = vcmp.eq.f32.partialorder %v2630_v29, %v2636_v63  ;;  %vm2638_vm13 = vcmp.eq.f32.partialorder %v2631_v60, %v2636_v63 }
0x1b87   :  { %v2639_v0 = vsel %vm2637_vm12, %v4456_v43, 256  ;;  %v2640_v2 = vsel %vm2638_vm13, %v4459_v44, 256 }
0x1b88   :  { %v2641_v59 = vsel %vm2600_vm5, %v2639_v0, 2147483647  ;;  %v2642_v21 = vsel %vm2600_vm5, %v2640_v2, 2147483647 }
0x1b89   :  { %vm2643_vm14 = vcmp.lt.s32.totalorder %v2641_v59, %v2642_v21 }
0x1b8a   :  { %v2644_v1 = vsel %vm2643_vm14, %v2641_v59, %v2642_v21 }
0x1b8b   :  { %v2646_v10 = vshra.s32 %v2644_v1, 16  ;;  %v2645_v6 = vand.u32 65535, %v2644_v1 }
0x1b8d   :  { %v2648_v17 = vcvt.s32.f32 %v2646_v10  ;;  %v2647_v7 = vcvt.s32.f32 %v2645_v6 }
0x1b8f   :  { %2649 = vmin.xlane.f32.xlu0 %v2648_v17 }
0x1c1c   :  { %v2650_v5 = vpop.xlane.xlu0 %2649 }
0x1c1d   :  { %vm2651_vm15 = vcmp.eq.f32.partialorder %v2648_v17, %v2650_v5  ;;  %v2656_v12 = vcvt.f32.s32 %v2650_v5 }
0x1c1e   :  { %v2652_v9 = vsel %vm2651_vm15, %v2647_v7, inf  ;;  %vm2756_vm15 = vcmask 23552  }
0x1c1f   :  { %2653 = vmin.xlane.f32.xlu1 %v2652_v9  ;;  %v2657_v13 = vshll.u32 %v2656_v12, 16 }
0x1cac   :  { %v2654_v37 = vpop.xlane.xlu1 %2653 }
0x1cad   :  { %v2655_v14 = vcvt.f32.s32 %v2654_v37 }
0x1caf   :  { %v2658_v15 = vadd.s32 %v2657_v13, %v2655_v14 }
0x1cb1   :  { %vm2659_vm0 = vcmp.eq.s32.totalorder %v4456_v43, %v2658_v15  ;;  %vm2660_vm1 = vcmp.eq.s32.totalorder %v4459_v44, %v2658_v15  ;;  %v2753_v42 = vsel %vm2752_vm7, %v4465_v58, %v2658_v15  ;;  %vm2758_vm7 = vcmask 31744  }
0x1cb2   :  { %v2661_v16 = vsel %vm2659_vm0, -inf, %v2630_v29  ;;  %v2662_v18 = vsel %vm2660_vm1, -inf, %v2631_v60 }
0x1cb3   :  { %v2663_v20 = vsel %vm2600_vm5, %v2661_v16, -inf  ;;  %v2664_v22 = vsel %vm2600_vm5, %v2662_v18, -inf }
0x1cb4   :  { %v2665_v23 = vmax.f32 %v2663_v20, %v2664_v22 }
0x1cb6   :  { %2666 = vmax.xlane.f32.xlu0 %v2665_v23 }
0x1d43   :  { %v2667_v24 = vpop.xlane.xlu0 %2666 }
0x1d44   :  { %vm2668_vm2 = vcmp.eq.f32.partialorder %v2661_v16, %v2667_v24  ;;  %vm2669_vm3 = vcmp.eq.f32.partialorder %v2662_v18, %v2667_v24 }
0x1d45   :  { %v2670_v25 = vsel %vm2668_vm2, %v4456_v43, 256  ;;  %v2671_v26 = vsel %vm2669_vm3, %v4459_v44, 256 }
0x1d46   :  { %v2672_v27 = vsel %vm2600_vm5, %v2670_v25, 2147483647  ;;  %v2673_v31 = vsel %vm2600_vm5, %v2671_v26, 2147483647 }
0x1d47   :  { %vm2674_vm4 = vcmp.lt.s32.totalorder %v2672_v27, %v2673_v31 }
0x1d48   :  { %v2675_v32 = vsel %vm2674_vm4, %v2672_v27, %v2673_v31 }
0x1d49   :  { %v2677_v30 = vshra.s32 %v2675_v32, 16  ;;  %v2676_v34 = vand.u32 65535, %v2675_v32 }
0x1d4b   :  { %v2679_v28 = vcvt.s32.f32 %v2677_v30  ;;  %v2678_v36 = vcvt.s32.f32 %v2676_v34 }
0x1d4d   :  { %2680 = vmin.xlane.f32.xlu1 %v2679_v28 }
0x1dda   :  { %v2681_v35 = vpop.xlane.xlu1 %2680 }
0x1ddb   :  { %vm2682_vm6 = vcmp.eq.f32.partialorder %v2679_v28, %v2681_v35  ;;  %v2687_v4 = vcvt.f32.s32 %v2681_v35 }
0x1ddc   :  { %v2683_v40 = vsel %vm2682_vm6, %v2678_v36, inf }
0x1ddd   :  { %2684 = vmin.xlane.f32.xlu0 %v2683_v40  ;;  %v2688_v33 = vshll.u32 %v2687_v4, 16 }
0x1e6a   :  { %v2685_v19 = vpop.xlane.xlu0 %2684 }
0x1e6b   :  { %v2686_v41 = vcvt.f32.s32 %v2685_v19 }
0x1e6d   :  { %v2689_v39 = vadd.s32 %v2688_v33, %v2686_v41 }
0x1e6f   :  { %v2755_v8 = vsel %vm2754_vm8, %v2753_v42, %v2689_v39  ;;  %vm2690_vm9 = vcmp.eq.s32.totalorder %v4456_v43, %v2689_v39  ;;  %vm2691_vm10 = vcmp.eq.s32.totalorder %v4459_v44, %v2689_v39 }
0x1e70   :  { %v2692_v11 = vsel %vm2690_vm9, -inf, %v2661_v16  ;;  %v2693_v45 = vsel %vm2691_vm10, -inf, %v2662_v18 }
0x1e71   :  { %v2694_v46 = vsel %vm2600_vm5, %v2692_v11, -inf  ;;  %v2695_v47 = vsel %vm2600_vm5, %v2693_v45, -inf }
0x1e72   :  { %v2696_v48 = vmax.f32 %v2694_v46, %v2695_v47 }
0x1e74   :  { %2697 = vmax.xlane.f32.xlu1 %v2696_v48 }
0x1f01   :  { %v2698_v50 = vpop.xlane.xlu1 %2697 }
0x1f02   :  { %vm2699_vm11 = vcmp.eq.f32.partialorder %v2692_v11, %v2698_v50  ;;  %vm2700_vm12 = vcmp.eq.f32.partialorder %v2693_v45, %v2698_v50 }
0x1f03   :  { %v2701_v52 = vsel %vm2699_vm11, %v4456_v43, 256  ;;  %v2702_v3 = vsel %vm2700_vm12, %v4459_v44, 256 }
0x1f04   :  { %v2703_v49 = vsel %vm2600_vm5, %v2701_v52, 2147483647  ;;  %v2704_v51 = vsel %vm2600_vm5, %v2702_v3, 2147483647 }
0x1f05   :  { %vm2705_vm13 = vcmp.lt.s32.totalorder %v2703_v49, %v2704_v51 }
0x1f06   :  { %v2706_v53 = vsel %vm2705_vm13, %v2703_v49, %v2704_v51 }
0x1f07   :  { %v2708_v54 = vshra.s32 %v2706_v53, 16  ;;  %v2707_v56 = vand.u32 65535, %v2706_v53 }
0x1f09   :  { %v2710_v55 = vcvt.s32.f32 %v2708_v54  ;;  %v2709_v58 = vcvt.s32.f32 %v2707_v56 }
0x1f0b   :  { %2711 = vmin.xlane.f32.xlu0 %v2710_v55 }
0x1f98   :  { %v2712_v57 = vpop.xlane.xlu0 %2711 }
0x1f99   :  { %vm2713_vm14 = vcmp.eq.f32.partialorder %v2710_v55, %v2712_v57  ;;  %v2718_v60 = vcvt.f32.s32 %v2712_v57 }
0x1f9a   :  { %v2714_v29 = vsel %vm2713_vm14, %v2709_v58, inf }
0x1f9b   :  { %2715 = vmin.xlane.f32.xlu1 %v2714_v29  ;;  %v2719_v38 = vshll.u32 %v2718_v60, 16 }
0x2028   :  { %v2716_v61 = vpop.xlane.xlu1 %2715 }
0x2029   :  { %v2717_v62 = vcvt.f32.s32 %v2716_v61 }
0x202b   :  { %v2720_v63 = vadd.s32 %v2719_v38, %v2717_v62 }
0x202d   :  { %vm2721_vm0 = vcmp.eq.s32.totalorder %v4456_v43, %v2720_v63  ;;  %vm2722_vm1 = vcmp.eq.s32.totalorder %v4459_v44, %v2720_v63  ;;  %v2757_v0 = vsel %vm2756_vm15, %v2755_v8, %v2720_v63 }
0x202e   :  { %v2723_v2 = vsel %vm2721_vm0, -inf, %v2692_v11  ;;  %v2724_v59 = vsel %vm2722_vm1, -inf, %v2693_v45 }
0x202f   :  { %v2725_v21 = vsel %vm2600_vm5, %v2723_v2, -inf  ;;  %v2726_v1 = vsel %vm2600_vm5, %v2724_v59, -inf }
0x2030   :  { %v2727_v10 = vmax.f32 %v2725_v21, %v2726_v1 }
0x2032   :  { %2728 = vmax.xlane.f32.xlu0 %v2727_v10 }
0x20bf   :  { %v2729_v17 = vpop.xlane.xlu0 %2728 }
0x20c0   :  { %vm2730_vm2 = vcmp.eq.f32.partialorder %v2723_v2, %v2729_v17  ;;  %vm2731_vm3 = vcmp.eq.f32.partialorder %v2724_v59, %v2729_v17 }
0x20c1   :  { %v2732_v6 = vsel %vm2730_vm2, %v4456_v43, 256  ;;  %v2733_v5 = vsel %vm2731_vm3, %v4459_v44, 256 }
0x20c2   :  { %v2734_v7 = vsel %vm2600_vm5, %v2732_v6, 2147483647  ;;  %v2735_v9 = vsel %vm2600_vm5, %v2733_v5, 2147483647  ;;  %vm2760_vm5 = vcmask 33792  }
0x20c3   :  { %vm2736_vm4 = vcmp.lt.s32.totalorder %v2734_v7, %v2735_v9 }
0x20c4   :  { %v2737_v12 = vsel %vm2736_vm4, %v2734_v7, %v2735_v9 }
0x20c5   :  { %v2739_v37 = vshra.s32 %v2737_v12, 16  ;;  %v2738_v14 = vand.u32 65535, %v2737_v12 }
0x20c7   :  { %v2741_v13 = vcvt.s32.f32 %v2739_v37  ;;  %v2740_v16 = vcvt.s32.f32 %v2738_v14 }
0x20c9   :  { %2742 = vmin.xlane.f32.xlu1 %v2741_v13 }
0x2156   :  { %v2743_v15 = vpop.xlane.xlu1 %2742 }
0x2157   :  { %vm2744_vm6 = vcmp.eq.f32.partialorder %v2741_v13, %v2743_v15  ;;  %v2749_v20 = vcvt.f32.s32 %v2743_v15 }
0x2158   :  { %v2745_v18 = vsel %vm2744_vm6, %v2740_v16, inf }
0x2159   :  { %2746 = vmin.xlane.f32.xlu0 %v2745_v18  ;;  %v2750_v43 = vshll.u32 %v2749_v20, 16 }
0x21e6   :  { %v2747_v22 = vpop.xlane.xlu0 %2746 }
0x21e7   :  { %v2748_v23 = vcvt.f32.s32 %v2747_v22 }
0x21e9   :  { %v2751_v44 = vadd.s32 %v2750_v43, %v2748_v23 }
0x21eb   :  { %v2759_v24 = vsel %vm2758_vm7, %v2757_v0, %v2751_v44 }
0x21ec   :  { %2761 = vst.msk [vmem:[#allocation2] sm:$0x3] %vm2760_vm5, %v2759_v24 }
0x21ed   :  { %3692 = shalt.err (!%p3689_p4)
}
0x21ee   :  { %s3693_s17 = scalar_lea.hbm %s4520_s6, 32 }
0x21ef   :  { %p3694_p5 = scmp.ne.s32.totalorder %s4520_s6, %s3693_s17  ;;  %p3697_p6 = scmp.lt.u32.totalorder %s3693_s17, %s4520_s6 }
0x21f1   :  { %p3699_p7 = pnand %p3697_p6, %p3694_p5 }
0x21f3   :  { %3702 = shalt.err (!%p3699_p7)
}
0x21f4   :  { %2771 = dma.vmem_to_hbm [thread:$0]  %s2769_s14, 32, %s4520_s6, [#allocation3]  }
0x21f5   :  { %3703 = dma.done.wait [#allocation3], 32  }
0x21f6   :  { %3704 = vsyncadd [#allocation3], 4294967264 }
0x21f7   :  { %2775 = vsyncpa [#allocation3], 1 }

</bundles_post_ra>
